<compile_context>
chip_gen: v7x
topology: tpu7x:2x2x1
jax: 0.10.0
libtpu: 0.0.40
codegen_flags: <defaults>
</compile_context>

<pallas_src>
import math

import jax
import jax.numpy as jnp
from jax.experimental import pallas as pl
from jax.experimental.pallas import tpu as pltpu

# ---- small, shape-consistent config (real model: 768 hidden, 12 layers) ----
VOCAB = 100
HIDDEN = 32
N_HEADS = 4
HEAD_DIM = HIDDEN // N_HEADS
N_LAYERS = 2
INTERMEDIATE = 64
MAX_POS = 64
PAD_ID = 1                  # xlm-roberta padding_idx
NUM_CLASSES = 7
NUM_CLASSES_PAD = 128       # lane-dense decoder output; sliced to NUM_CLASSES outside
LN_EPS = 1e-5
BATCH = 2
SEQ = 8
MASK_NEG = -1e9             # safer than finfo.min (avoids -inf/NaN corner cases)

_INV_SQRT2 = 0.7071067811865476


# --------------------------- in-kernel helpers -------------------------------
def _gelu(x):
    # exact (erf-based) GELU, matching transformers' "gelu" activation
    return 0.5 * x * (1.0 + jax.lax.erf(x * _INV_SQRT2))


def _layernorm(x, gamma, beta):
    mean = jnp.mean(x, axis=-1, keepdims=True)
    xc = x - mean
    var = jnp.mean(xc * xc, axis=-1, keepdims=True)
    return xc * jax.lax.rsqrt(var + LN_EPS) * gamma + beta


# ------------------- single fused encoder + MLM-head kernel ------------------
def _xlmr_kernel(x_ref, bias_ref, eg_ref, eb_ref,
                 qkv_w_ref, qkv_b_ref, ow_ref, ob_ref,
                 ln1g_ref, ln1b_ref, iw_ref, ib_ref,
                 fw_ref, fb_ref, ln2g_ref, ln2b_ref,
                 hdw_ref, hdb_ref, hlg_ref, hlb_ref, decw_ref, decb_ref,
                 logits_ref, act_ref):
    layer = pl.program_id(0)
    last = pl.num_programs(0) - 1

    # Initialize the VMEM-resident (B*S, H) activation slab with the embedding
    # LayerNorm on the first layer step only.
    @pl.when(layer == 0)
    def _():
        act_ref[...] = _layernorm(x_ref[...].astype(jnp.float32),
                                  eg_ref[...].astype(jnp.float32),
                                  eb_ref[...].astype(jnp.float32))

    x = act_ref[...]                                   # (B*S, H) f32, stays in VMEM
    bias = bias_ref[...].astype(jnp.float32)           # (B, S) additive key mask

    # Hoist small per-layer params once per grid step (no per-use casts/bcasts).
    qkv_b = qkv_b_ref[...].astype(jnp.float32)
    o_w = ow_ref[...].astype(jnp.float32)
    o_b = ob_ref[...].astype(jnp.float32)
    ln1_g = ln1g_ref[...].astype(jnp.float32)
    ln1_b = ln1b_ref[...].astype(jnp.float32)
    i_b = ib_ref[...].astype(jnp.float32)
    f_b = fb_ref[...].astype(jnp.float32)
    ln2_g = ln2g_ref[...].astype(jnp.float32)
    ln2_b = ln2b_ref[...].astype(jnp.float32)

    # ---- fused QKV projection (1/sqrt(dh) already folded into Q weights) ----
    qkv = (jnp.dot(x, qkv_w_ref[...].astype(jnp.float32),
                   preferred_element_type=jnp.float32) + qkv_b)      # (B*S, 3H)

    # ---- self attention: per-sequence / per-head scores, softmax, context;
    #      head contexts merged into one (B*S, H) buffer so the output
    #      projection is a single matmul (K=H, not K=HEAD_DIM) ----
    # A·Bᵀ orientation (contraction on last dims) is the standard MXU-friendly
    # flash layout; no explicit K transpose is materialized.
    # TODO(synk): at real 12-head / S=512 size, replace the static Python
    # loops with lax.fori_loop(..., unroll=True) / batched einsum.
    seq_ctx = []
    for b in range(BATCH):
        r0 = b * SEQ
        bias_b = bias[b:b + 1, :]                                    # (1, S)
        parts = []
        for h in range(N_HEADS):
            lo = h * HEAD_DIM
            q_h = qkv[r0:r0 + SEQ, lo:lo + HEAD_DIM]                         # (S, dh)
            k_h = qkv[r0:r0 + SEQ, HIDDEN + lo:HIDDEN + lo + HEAD_DIM]       # (S, dh)
            v_h = qkv[r0:r0 + SEQ, 2 * HIDDEN + lo:2 * HIDDEN + lo + HEAD_DIM]
            s = jax.lax.dot_general(q_h, k_h, (((1,), (1,)), ((), ())),
                                    preferred_element_type=jnp.float32) + bias_b
            s = s - jnp.max(s, axis=-1, keepdims=True)
            p = jnp.exp(s)
            # approx reciprocal: EUP slot; fine for inference (not bit-exact vs HF)
            p = p * pl.reciprocal(jnp.sum(p, axis=-1, keepdims=True), approx=True)
            parts.append(jnp.dot(p, v_h, preferred_element_type=jnp.float32))  # (S, dh)
        seq_ctx.append(jnp.concatenate(parts, axis=-1))              # (S, H)
    ctx = jnp.concatenate(seq_ctx, axis=0)                           # (B*S, H)
    attn = jnp.dot(ctx, o_w, preferred_element_type=jnp.float32) + o_b

    # ---- residual + LN1 (fused) ----
    h1 = _layernorm(attn + x, ln1_g, ln1_b)

    # ---- feed forward ----
    inter = _gelu(jnp.dot(h1, iw_ref[...].astype(jnp.float32),
                          preferred_element_type=jnp.float32) + i_b)
    ffn = (jnp.dot(inter, fw_ref[...].astype(jnp.float32),
                   preferred_element_type=jnp.float32) + f_b)

    # ---- residual + LN2 (fused) ----
    h2 = _layernorm(ffn + h1, ln2_g, ln2_b)
    act_ref[...] = h2                                  # VMEM-only; no HBM store

    # ---- fused MLM head, run (and stored) only on the final layer step ----
    @pl.when(layer == last)
    def _():
        y = (jnp.dot(h2, hdw_ref[...].astype(jnp.float32),
                     preferred_element_type=jnp.float32)
             + hdb_ref[...].astype(jnp.float32))
        y = _layernorm(_gelu(y),
                       hlg_ref[...].astype(jnp.float32),
                       hlb_ref[...].astype(jnp.float32))
        logits = (jnp.dot(y, decw_ref[...].astype(jnp.float32),
                          preferred_element_type=jnp.float32)
                  + decb_ref[...].astype(jnp.float32))               # (B*S, 128) lane-dense
        logits_ref[...] = logits.astype(logits_ref.dtype)


def xlmr_fused(x_emb, bias, p):
    """x_emb: (B, S, H) embeddings; bias: (B, S) additive mask; returns (B,S,NUM_CLASSES)."""
    B, S, H = x_emb.shape
    L = p["qkv_w"].shape[0]
    x2 = x_emb.reshape(B * S, H)                 # layout plumbing outside the kernel
    per_layer = lambda l: (l, 0, 0)
    shared2 = lambda l: (0, 0)

    logits_pad = pl.pallas_call(
        _xlmr_kernel,
        out_shape=jax.ShapeDtypeStruct((B * S, NUM_CLASSES_PAD), jnp.float32),
        grid_spec=pltpu.PrefetchScalarGridSpec(
            num_scalar_prefetch=0,
            grid=(L,),
            in_specs=[
                pl.BlockSpec((B * S, H), shared2),                    # embeddings (flat)
                pl.BlockSpec((B, S), shared2),                        # attn bias
                pl.BlockSpec((1, H), shared2),                        # emb_ln_g
                pl.BlockSpec((1, H), shared2),                        # emb_ln_b
                pl.BlockSpec((None, H, 3 * H), per_layer),            # qkv_w
                pl.BlockSpec((None, 1, 3 * H), per_layer),            # qkv_b
                pl.BlockSpec((None, H, H), per_layer),                # o_w
                pl.BlockSpec((None, 1, H), per_layer),                # o_b
                pl.BlockSpec((None, 1, H), per_layer),                # ln1_g
                pl.BlockSpec((None, 1, H), per_layer),                # ln1_b
                pl.BlockSpec((None, H, INTERMEDIATE), per_layer),     # i_w
                pl.BlockSpec((None, 1, INTERMEDIATE), per_layer),     # i_b
                pl.BlockSpec((None, INTERMEDIATE, H), per_layer),     # f_w
                pl.BlockSpec((None, 1, H), per_layer),                # f_b
                pl.BlockSpec((None, 1, H), per_layer),                # ln2_g
                pl.BlockSpec((None, 1, H), per_layer),                # ln2_b
                pl.BlockSpec((H, H), shared2),                        # head_dense_w
                pl.BlockSpec((1, H), shared2),                        # head_dense_b
                pl.BlockSpec((1, H), shared2),                        # head_ln_g
                pl.BlockSpec((1, H), shared2),                        # head_ln_b
                pl.BlockSpec((H, NUM_CLASSES_PAD), shared2),          # dec_w_pad
                pl.BlockSpec((1, NUM_CLASSES_PAD), shared2),          # dec_b_pad
            ],
            out_specs=pl.BlockSpec((B * S, NUM_CLASSES_PAD), shared2),
            scratch_shapes=[pltpu.VMEM((B * S, H), jnp.float32)],     # resident activations
        ),
        # Layer axis is a carried dependency -> "arbitrary".
        # TODO(synk): at real dims set vmem_limit_bytes here (esp. v7x) and use
        # bf16 weight streams / Buffered(3) weight specs.
        compiler_params=pltpu.CompilerParams(dimension_semantics=("arbitrary",)),
    )(x2, bias, p["emb_ln_g"], p["emb_ln_b"],
      p["qkv_w"], p["qkv_b"], p["o_w"], p["o_b"],
      p["ln1_g"], p["ln1_b"], p["i_w"], p["i_b"],
      p["f_w"], p["f_b"], p["ln2_g"], p["ln2_b"],
      p["head_dense_w"], p["head_dense_b"], p["head_ln_g"], p["head_ln_b"],
      p["dec_w_pad"], p["dec_b_pad"])

    return logits_pad.reshape(B, S, NUM_CLASSES_PAD)[:, :, :NUM_CLASSES]


# --------------------------- model glue (plain JAX) --------------------------
def init_params(key):
    keys = iter(jax.random.split(key, 64))

    def w(shape, std=0.02):
        return jax.random.normal(next(keys), shape, jnp.float32) * std

    word_emb = w((VOCAB, HIDDEN)).at[PAD_ID].set(0.0)   # padding_idx row = 0
    pos_emb = w((MAX_POS, HIDDEN)).at[PAD_ID].set(0.0)

    scale = 1.0 / math.sqrt(HEAD_DIM)
    qkv_w, qkv_b, o_w, o_b = [], [], [], []
    ln1_g, ln1_b, i_w, i_b, f_w, f_b, ln2_g, ln2_b = ([] for _ in range(8))
    for _ in range(N_LAYERS):
        qw, kw, vw = w((HIDDEN, HIDDEN)), w((HIDDEN, HIDDEN)), w((HIDDEN, HIDDEN))
        qb = jnp.zeros((HIDDEN,), jnp.float32)
        kb = jnp.zeros((HIDDEN,), jnp.float32)
        vb = jnp.zeros((HIDDEN,), jnp.float32)
        # concat QKV and fold the 1/sqrt(dh) softmax scale into Q weight AND bias
        qkv_w.append(jnp.concatenate([qw * scale, kw, vw], axis=1))
        qkv_b.append(jnp.concatenate([qb * scale, kb, vb]).reshape(1, 3 * HIDDEN))
        o_w.append(w((HIDDEN, HIDDEN)))
        o_b.append(jnp.zeros((1, HIDDEN), jnp.float32))
        ln1_g.append(jnp.ones((1, HIDDEN), jnp.float32))
        ln1_b.append(jnp.zeros((1, HIDDEN), jnp.float32))
        i_w.append(w((HIDDEN, INTERMEDIATE)))
        i_b.append(jnp.zeros((1, INTERMEDIATE), jnp.float32))
        f_w.append(w((INTERMEDIATE, HIDDEN)))
        f_b.append(jnp.zeros((1, HIDDEN), jnp.float32))
        ln2_g.append(jnp.ones((1, HIDDEN), jnp.float32))
        ln2_b.append(jnp.zeros((1, HIDDEN), jnp.float32))

    dec_w = w((HIDDEN, NUM_CLASSES))
    dec_b = jnp.zeros((NUM_CLASSES,), jnp.float32)
    # pad the decoder to 128 output lanes (zeros); slice back to 7 outside
    dec_w_pad = jnp.zeros((HIDDEN, NUM_CLASSES_PAD), jnp.float32).at[:, :NUM_CLASSES].set(dec_w)
    dec_b_pad = jnp.zeros((1, NUM_CLASSES_PAD), jnp.float32).at[0, :NUM_CLASSES].set(dec_b)

    return {
        "word_emb": word_emb,
        "pos_emb": pos_emb,
        "type_emb": w((1, HIDDEN)),
        "emb_ln_g": jnp.ones((1, HIDDEN), jnp.float32),
        "emb_ln_b": jnp.zeros((1, HIDDEN), jnp.float32),
        "qkv_w": jnp.stack(qkv_w), "qkv_b": jnp.stack(qkv_b),
        "o_w": jnp.stack(o_w), "o_b": jnp.stack(o_b),
        "ln1_g": jnp.stack(ln1_g), "ln1_b": jnp.stack(ln1_b),
        "i_w": jnp.stack(i_w), "i_b": jnp.stack(i_b),
        "f_w": jnp.stack(f_w), "f_b": jnp.stack(f_b),
        "ln2_g": jnp.stack(ln2_g), "ln2_b": jnp.stack(ln2_b),
        "head_dense_w": w((HIDDEN, HIDDEN)),
        "head_dense_b": jnp.zeros((1, HIDDEN), jnp.float32),
        "head_ln_g": jnp.ones((1, HIDDEN), jnp.float32),
        "head_ln_b": jnp.zeros((1, HIDDEN), jnp.float32),
        "dec_w_pad": dec_w_pad,
        "dec_b_pad": dec_b_pad,
    }


def xlm_roberta_forward(params, input_ids, attention_mask):
    B, S = input_ids.shape

    # RoBERTa position ids: cumsum over non-pad tokens, offset by padding_idx
    not_pad = (input_ids != PAD_ID).astype(jnp.int32)
    position_ids = jnp.cumsum(not_pad, axis=1) * not_pad + PAD_ID

    # TODO(synk): embedding gathers stay in XLA — a Pallas gather kernel gives
    # no benefit at this size (and dropout is identity in inference mode).
    x = (params["word_emb"][input_ids]
         + params["pos_emb"][position_ids]
         + params["type_emb"][0][None, None, :])                    # (B, S, H)

    # extended additive attention mask (HF-style, but -1e9 instead of finfo.min)
    bias = (1.0 - attention_mask.astype(jnp.float32)) * MASK_NEG    # (B, S)

    # TODO(synk): HF returns a MaskedLMOutput wrapper; we return the logits tensor.
    return xlmr_fused(x, bias, params)                              # (B, S, NUM_CLASSES)


if __name__ == "__main__":
    key = jax.random.PRNGKey(0)
    pkey, ikey = jax.random.split(key)
    params = init_params(pkey)

    input_ids = jax.random.randint(ikey, (BATCH, SEQ), 2, VOCAB, dtype=jnp.int32)
    # pad the tail of the second sequence
    input_ids = input_ids.at[1, -2:].set(PAD_ID)
    attention_mask = jnp.ones((BATCH, SEQ), jnp.int32).at[1, -2:].set(0)

    fwd = jax.jit(xlm_roberta_forward)
    logits = fwd(params, input_ids, attention_mask)
    logits = jax.block_until_ready(logits)
    assert logits.shape == (BATCH, SEQ, NUM_CLASSES)
    assert bool(jnp.all(jnp.isfinite(logits)))
    print("KERNEL_OK")
</pallas_src>

<mosaic_0001>
module attributes {stable_mosaic.version = 11 : i64} {
  func.func @_xlmr_kernel(%arg0: i32, %arg1: memref<16x32xf32, #tpu.memory_space<vmem>>, %arg2: memref<2x8xf32, #tpu.memory_space<vmem>>, %arg3: memref<1x32xf32, #tpu.memory_space<vmem>>, %arg4: memref<1x32xf32, #tpu.memory_space<vmem>>, %arg5: memref<1x32x96xf32, #tpu.memory_space<vmem>>, %arg6: memref<1x1x96xf32, #tpu.memory_space<vmem>>, %arg7: memref<1x32x32xf32, #tpu.memory_space<vmem>>, %arg8: memref<1x1x32xf32, #tpu.memory_space<vmem>>, %arg9: memref<1x1x32xf32, #tpu.memory_space<vmem>>, %arg10: memref<1x1x32xf32, #tpu.memory_space<vmem>>, %arg11: memref<1x32x64xf32, #tpu.memory_space<vmem>>, %arg12: memref<1x1x64xf32, #tpu.memory_space<vmem>>, %arg13: memref<1x64x32xf32, #tpu.memory_space<vmem>>, %arg14: memref<1x1x32xf32, #tpu.memory_space<vmem>>, %arg15: memref<1x1x32xf32, #tpu.memory_space<vmem>>, %arg16: memref<1x1x32xf32, #tpu.memory_space<vmem>>, %arg17: memref<32x32xf32, #tpu.memory_space<vmem>>, %arg18: memref<1x32xf32, #tpu.memory_space<vmem>>, %arg19: memref<1x32xf32, #tpu.memory_space<vmem>>, %arg20: memref<1x32xf32, #tpu.memory_space<vmem>>, %arg21: memref<32x128xf32, #tpu.memory_space<vmem>>, %arg22: memref<1x128xf32, #tpu.memory_space<vmem>>, %arg23: memref<16x128xf32, #tpu.memory_space<vmem>>, %arg24: memref<16x32xf32, #tpu.memory_space<vmem>>) attributes {dimension_semantics = [#tpu.dimension_semantics<arbitrary>], iteration_bounds = array<i64: 2>, scalar_prefetch = 0 : i64, scratch_operands = 1 : i64, tpu.core_type = #tpu.core_type<tc>, window_params = [{pipeline_mode = #tpu.pipeline_mode<synchronous>, transform_indices = @transform_0, window_bounds = array<i64: 16, 32>}, {pipeline_mode = #tpu.pipeline_mode<synchronous>, transform_indices = @transform_1, window_bounds = array<i64: 2, 8>}, {pipeline_mode = #tpu.pipeline_mode<synchronous>, transform_indices = @transform_2, window_bounds = array<i64: 1, 32>}, {pipeline_mode = #tpu.pipeline_mode<synchronous>, transform_indices = @transform_3, window_bounds = array<i64: 1, 32>}, {transform_indices = @transform_4, window_bounds = array<i64: 1, 32, 96>}, {transform_indices = @transform_5, window_bounds = array<i64: 1, 1, 96>}, {transform_indices = @transform_6, window_bounds = array<i64: 1, 32, 32>}, {transform_indices = @transform_7, window_bounds = array<i64: 1, 1, 32>}, {transform_indices = @transform_8, window_bounds = array<i64: 1, 1, 32>}, {transform_indices = @transform_9, window_bounds = array<i64: 1, 1, 32>}, {transform_indices = @transform_10, window_bounds = array<i64: 1, 32, 64>}, {transform_indices = @transform_11, window_bounds = array<i64: 1, 1, 64>}, {transform_indices = @transform_12, window_bounds = array<i64: 1, 64, 32>}, {transform_indices = @transform_13, window_bounds = array<i64: 1, 1, 32>}, {transform_indices = @transform_14, window_bounds = array<i64: 1, 1, 32>}, {transform_indices = @transform_15, window_bounds = array<i64: 1, 1, 32>}, {pipeline_mode = #tpu.pipeline_mode<synchronous>, transform_indices = @transform_16, window_bounds = array<i64: 32, 32>}, {pipeline_mode = #tpu.pipeline_mode<synchronous>, transform_indices = @transform_17, window_bounds = array<i64: 1, 32>}, {pipeline_mode = #tpu.pipeline_mode<synchronous>, transform_indices = @transform_18, window_bounds = array<i64: 1, 32>}, {pipeline_mode = #tpu.pipeline_mode<synchronous>, transform_indices = @transform_19, window_bounds = array<i64: 1, 32>}, {pipeline_mode = #tpu.pipeline_mode<synchronous>, transform_indices = @transform_20, window_bounds = array<i64: 32, 128>}, {pipeline_mode = #tpu.pipeline_mode<synchronous>, transform_indices = @transform_21, window_bounds = array<i64: 1, 128>}, {pipeline_mode = #tpu.pipeline_mode<synchronous>, transform_indices = @transform_22, window_bounds = array<i64: 16, 128>}]} {
    %c0_i32 = arith.constant 0 : i32
    %0 = arith.cmpi eq, %arg0, %c0_i32 : i32
    %1 = arith.extui %0 : i1 to i32
    %c0_i32_0 = arith.constant 0 : i32
    %2 = arith.cmpi ne, %1, %c0_i32_0 : i32
    scf.if %2 {
      %c0_91 = arith.constant 0 : index
      %c0_92 = arith.constant 0 : index
      %236 = vector.load %arg1[%c0_91, %c0_92] : memref<16x32xf32, #tpu.memory_space<vmem>>, vector<16x32xf32>
      %c0_93 = arith.constant 0 : index
      %c0_94 = arith.constant 0 : index
      %237 = vector.load %arg3[%c0_93, %c0_94] : memref<1x32xf32, #tpu.memory_space<vmem>>, vector<1x32xf32>
      %c0_95 = arith.constant 0 : index
      %c0_96 = arith.constant 0 : index
      %238 = vector.load %arg4[%c0_95, %c0_96] : memref<1x32xf32, #tpu.memory_space<vmem>>, vector<1x32xf32>
      %cst_97 = arith.constant dense<0.000000e+00> : vector<16xf32>
      %239 = vector.multi_reduction <add>, %236, %cst_97 [1] : vector<16x32xf32> to vector<16xf32>
      %240 = vector.shape_cast %239 : vector<16xf32> to vector<16x1xf32>
      %cst_98 = arith.constant 3.200000e+01 : f32
      %241 = vector.broadcast %cst_98 : f32 to vector<16x1xf32>
      %242 = arith.divf %240, %241 : vector<16x1xf32>
      %243 = vector.broadcast %242 : vector<16x1xf32> to vector<16x32xf32>
      %244 = arith.subf %236, %243 : vector<16x32xf32>
      %245 = arith.mulf %244, %244 : vector<16x32xf32>
      %cst_99 = arith.constant dense<0.000000e+00> : vector<16xf32>
      %246 = vector.multi_reduction <add>, %245, %cst_99 [1] : vector<16x32xf32> to vector<16xf32>
      %247 = vector.shape_cast %246 : vector<16xf32> to vector<16x1xf32>
      %cst_100 = arith.constant 3.200000e+01 : f32
      %248 = vector.broadcast %cst_100 : f32 to vector<16x1xf32>
      %249 = arith.divf %247, %248 : vector<16x1xf32>
      %cst_101 = arith.constant 9.99999974E-6 : f32
      %250 = vector.broadcast %cst_101 : f32 to vector<16x1xf32>
      %251 = arith.addf %249, %250 : vector<16x1xf32>
      %252 = math.rsqrt %251 : vector<16x1xf32>
      %253 = vector.broadcast %252 : vector<16x1xf32> to vector<16x32xf32>
      %254 = arith.mulf %244, %253 : vector<16x32xf32>
      %255 = vector.broadcast %237 : vector<1x32xf32> to vector<16x32xf32>
      %256 = arith.mulf %254, %255 : vector<16x32xf32>
      %257 = vector.broadcast %238 : vector<1x32xf32> to vector<16x32xf32>
      %258 = arith.addf %256, %257 : vector<16x32xf32>
      %c0_102 = arith.constant 0 : index
      %c0_103 = arith.constant 0 : index
      %259 = vector.load %arg24[%c0_102, %c0_103] : memref<16x32xf32, #tpu.memory_space<vmem>>, vector<16x32xf32>
      tpu.vector_store %arg24[%c0_102, %c0_103], %258 {strides = array<i32>} : memref<16x32xf32, #tpu.memory_space<vmem>>, vector<16x32xf32>,
    } else {
    }
    %c0 = arith.constant 0 : index
    %c0_1 = arith.constant 0 : index
    %3 = vector.load %arg24[%c0, %c0_1] : memref<16x32xf32, #tpu.memory_space<vmem>>, vector<16x32xf32>
    %c0_2 = arith.constant 0 : index
    %c0_3 = arith.constant 0 : index
    %4 = vector.load %arg2[%c0_2, %c0_3] : memref<2x8xf32, #tpu.memory_space<vmem>>, vector<2x8xf32>
    %c0_4 = arith.constant 0 : index
    %c0_5 = arith.constant 0 : index
    %c0_6 = arith.constant 0 : index
    %5 = vector.load %arg6[%c0_4, %c0_5, %c0_6] : memref<1x1x96xf32, #tpu.memory_space<vmem>>, vector<1x1x96xf32>
    %6 = vector.shape_cast %5 : vector<1x1x96xf32> to vector<1x96xf32>
    %c0_7 = arith.constant 0 : index
    %c0_8 = arith.constant 0 : index
    %c0_9 = arith.constant 0 : index
    %7 = vector.load %arg7[%c0_7, %c0_8, %c0_9] : memref<1x32x32xf32, #tpu.memory_space<vmem>>, vector<1x32x32xf32>
    %8 = vector.shape_cast %7 : vector<1x32x32xf32> to vector<32x32xf32>
    %c0_10 = arith.constant 0 : index
    %c0_11 = arith.constant 0 : index
    %c0_12 = arith.constant 0 : index
    %9 = vector.load %arg8[%c0_10, %c0_11, %c0_12] : memref<1x1x32xf32, #tpu.memory_space<vmem>>, vector<1x1x32xf32>
    %10 = vector.shape_cast %9 : vector<1x1x32xf32> to vector<1x32xf32>
    %c0_13 = arith.constant 0 : index
    %c0_14 = arith.constant 0 : index
    %c0_15 = arith.constant 0 : index
    %11 = vector.load %arg9[%c0_13, %c0_14, %c0_15] : memref<1x1x32xf32, #tpu.memory_space<vmem>>, vector<1x1x32xf32>
    %12 = vector.shape_cast %11 : vector<1x1x32xf32> to vector<1x32xf32>
    %c0_16 = arith.constant 0 : index
    %c0_17 = arith.constant 0 : index
    %c0_18 = arith.constant 0 : index
    %13 = vector.load %arg10[%c0_16, %c0_17, %c0_18] : memref<1x1x32xf32, #tpu.memory_space<vmem>>, vector<1x1x32xf32>
    %14 = vector.shape_cast %13 : vector<1x1x32xf32> to vector<1x32xf32>
    %c0_19 = arith.constant 0 : index
    %c0_20 = arith.constant 0 : index
    %c0_21 = arith.constant 0 : index
    %15 = vector.load %arg12[%c0_19, %c0_20, %c0_21] : memref<1x1x64xf32, #tpu.memory_space<vmem>>, vector<1x1x64xf32>
    %16 = vector.shape_cast %15 : vector<1x1x64xf32> to vector<1x64xf32>
    %c0_22 = arith.constant 0 : index
    %c0_23 = arith.constant 0 : index
    %c0_24 = arith.constant 0 : index
    %17 = vector.load %arg14[%c0_22, %c0_23, %c0_24] : memref<1x1x32xf32, #tpu.memory_space<vmem>>, vector<1x1x32xf32>
    %18 = vector.shape_cast %17 : vector<1x1x32xf32> to vector<1x32xf32>
    %c0_25 = arith.constant 0 : index
    %c0_26 = arith.constant 0 : index
    %c0_27 = arith.constant 0 : index
    %19 = vector.load %arg15[%c0_25, %c0_26, %c0_27] : memref<1x1x32xf32, #tpu.memory_space<vmem>>, vector<1x1x32xf32>
    %20 = vector.shape_cast %19 : vector<1x1x32xf32> to vector<1x32xf32>
    %c0_28 = arith.constant 0 : index
    %c0_29 = arith.constant 0 : index
    %c0_30 = arith.constant 0 : index
    %21 = vector.load %arg16[%c0_28, %c0_29, %c0_30] : memref<1x1x32xf32, #tpu.memory_space<vmem>>, vector<1x1x32xf32>
    %22 = vector.shape_cast %21 : vector<1x1x32xf32> to vector<1x32xf32>
    %c0_31 = arith.constant 0 : index
    %c0_32 = arith.constant 0 : index
    %c0_33 = arith.constant 0 : index
    %23 = vector.load %arg5[%c0_31, %c0_32, %c0_33] : memref<1x32x96xf32, #tpu.memory_space<vmem>>, vector<1x32x96xf32>
    %24 = vector.shape_cast %23 : vector<1x32x96xf32> to vector<32x96xf32>
    %cst = arith.constant dense<0.000000e+00> : vector<16x96xf32>
    %25 = tpu.matmul %3, %24, %cst {dimension_numbers = #tpu.dot_dimension_numbers<[1], [0], [0], [1], [0, 0, 1, 1], [], []>} : vector<16x32xf32>, vector<32x96xf32>, vector<16x96xf32> -> vector<16x96xf32>
    %26 = vector.broadcast %6 : vector<1x96xf32> to vector<16x96xf32>
    %27 = arith.addf %25, %26 : vector<16x96xf32>
    %28 = vector.extract_strided_slice %4 {offsets = [0, 0], sizes = [1, 8], strides = [1, 1]} : vector<2x8xf32> to vector<1x8xf32>
    %29 = vector.extract_strided_slice %27 {offsets = [0, 0], sizes = [8, 8], strides = [1, 1]} : vector<16x96xf32> to vector<8x8xf32>
    %30 = vector.extract_strided_slice %27 {offsets = [0, 32], sizes = [8, 8], strides = [1, 1]} : vector<16x96xf32> to vector<8x8xf32>
    %31 = vector.extract_strided_slice %27 {offsets = [0, 64], sizes = [8, 8], strides = [1, 1]} : vector<16x96xf32> to vector<8x8xf32>
    %cst_34 = arith.constant dense<0.000000e+00> : vector<8x8xf32>
    %32 = tpu.matmul %29, %30, %cst_34 {dimension_numbers = #tpu.dot_dimension_numbers<[1], [1], [0], [0], [0, 0, 1, 0], [], []>} : vector<8x8xf32>, vector<8x8xf32>, vector<8x8xf32> -> vector<8x8xf32>
    %33 = vector.broadcast %28 : vector<1x8xf32> to vector<8x8xf32>
    %34 = arith.addf %32, %33 : vector<8x8xf32>
    %cst_35 = arith.constant dense<0xFF800000> : vector<8xf32>
    %35 = vector.multi_reduction <maximumf>, %34, %cst_35 [1] : vector<8x8xf32> to vector<8xf32>
    %36 = vector.shape_cast %35 : vector<8xf32> to vector<8x1xf32>
    %37 = vector.broadcast %36 : vector<8x1xf32> to vector<8x8xf32>
    %38 = arith.subf %34, %37 : vector<8x8xf32>
    %39 = math.exp %38 : vector<8x8xf32>
    %cst_36 = arith.constant dense<0.000000e+00> : vector<8xf32>
    %40 = vector.multi_reduction <add>, %39, %cst_36 [1] : vector<8x8xf32> to vector<8xf32>
    %41 = vector.shape_cast %40 : vector<8xf32> to vector<8x1xf32>
    %42 = tpu.reciprocal %41 {approx = true} : vector<8x1xf32> -> vector<8x1xf32>
    %43 = vector.broadcast %42 : vector<8x1xf32> to vector<8x8xf32>
    %44 = arith.mulf %39, %43 : vector<8x8xf32>
    %cst_37 = arith.constant dense<0.000000e+00> : vector<8x8xf32>
    %45 = tpu.matmul %44, %31, %cst_37 {dimension_numbers = #tpu.dot_dimension_numbers<[1], [0], [0], [1], [0, 0, 1, 1], [], []>} : vector<8x8xf32>, vector<8x8xf32>, vector<8x8xf32> -> vector<8x8xf32>
    %46 = vector.extract_strided_slice %27 {offsets = [0, 8], sizes = [8, 8], strides = [1, 1]} : vector<16x96xf32> to vector<8x8xf32>
    %47 = vector.extract_strided_slice %27 {offsets = [0, 40], sizes = [8, 8], strides = [1, 1]} : vector<16x96xf32> to vector<8x8xf32>
    %48 = vector.extract_strided_slice %27 {offsets = [0, 72], sizes = [8, 8], strides = [1, 1]} : vector<16x96xf32> to vector<8x8xf32>
    %cst_38 = arith.constant dense<0.000000e+00> : vector<8x8xf32>
    %49 = tpu.matmul %46, %47, %cst_38 {dimension_numbers = #tpu.dot_dimension_numbers<[1], [1], [0], [0], [0, 0, 1, 0], [], []>} : vector<8x8xf32>, vector<8x8xf32>, vector<8x8xf32> -> vector<8x8xf32>
    %50 = vector.broadcast %28 : vector<1x8xf32> to vector<8x8xf32>
    %51 = arith.addf %49, %50 : vector<8x8xf32>
    %cst_39 = arith.constant dense<0xFF800000> : vector<8xf32>
    %52 = vector.multi_reduction <maximumf>, %51, %cst_39 [1] : vector<8x8xf32> to vector<8xf32>
    %53 = vector.shape_cast %52 : vector<8xf32> to vector<8x1xf32>
    %54 = vector.broadcast %53 : vector<8x1xf32> to vector<8x8xf32>
    %55 = arith.subf %51, %54 : vector<8x8xf32>
    %56 = math.exp %55 : vector<8x8xf32>
    %cst_40 = arith.constant dense<0.000000e+00> : vector<8xf32>
    %57 = vector.multi_reduction <add>, %56, %cst_40 [1] : vector<8x8xf32> to vector<8xf32>
    %58 = vector.shape_cast %57 : vector<8xf32> to vector<8x1xf32>
    %59 = tpu.reciprocal %58 {approx = true} : vector<8x1xf32> -> vector<8x1xf32>
    %60 = vector.broadcast %59 : vector<8x1xf32> to vector<8x8xf32>
    %61 = arith.mulf %56, %60 : vector<8x8xf32>
    %cst_41 = arith.constant dense<0.000000e+00> : vector<8x8xf32>
    %62 = tpu.matmul %61, %48, %cst_41 {dimension_numbers = #tpu.dot_dimension_numbers<[1], [0], [0], [1], [0, 0, 1, 1], [], []>} : vector<8x8xf32>, vector<8x8xf32>, vector<8x8xf32> -> vector<8x8xf32>
    %63 = vector.extract_strided_slice %27 {offsets = [0, 16], sizes = [8, 8], strides = [1, 1]} : vector<16x96xf32> to vector<8x8xf32>
    %64 = vector.extract_strided_slice %27 {offsets = [0, 48], sizes = [8, 8], strides = [1, 1]} : vector<16x96xf32> to vector<8x8xf32>
    %65 = vector.extract_strided_slice %27 {offsets = [0, 80], sizes = [8, 8], strides = [1, 1]} : vector<16x96xf32> to vector<8x8xf32>
    %cst_42 = arith.constant dense<0.000000e+00> : vector<8x8xf32>
    %66 = tpu.matmul %63, %64, %cst_42 {dimension_numbers = #tpu.dot_dimension_numbers<[1], [1], [0], [0], [0, 0, 1, 0], [], []>} : vector<8x8xf32>, vector<8x8xf32>, vector<8x8xf32> -> vector<8x8xf32>
    %67 = vector.broadcast %28 : vector<1x8xf32> to vector<8x8xf32>
    %68 = arith.addf %66, %67 : vector<8x8xf32>
    %cst_43 = arith.constant dense<0xFF800000> : vector<8xf32>
    %69 = vector.multi_reduction <maximumf>, %68, %cst_43 [1] : vector<8x8xf32> to vector<8xf32>
    %70 = vector.shape_cast %69 : vector<8xf32> to vector<8x1xf32>
    %71 = vector.broadcast %70 : vector<8x1xf32> to vector<8x8xf32>
    %72 = arith.subf %68, %71 : vector<8x8xf32>
    %73 = math.exp %72 : vector<8x8xf32>
    %cst_44 = arith.constant dense<0.000000e+00> : vector<8xf32>
    %74 = vector.multi_reduction <add>, %73, %cst_44 [1] : vector<8x8xf32> to vector<8xf32>
    %75 = vector.shape_cast %74 : vector<8xf32> to vector<8x1xf32>
    %76 = tpu.reciprocal %75 {approx = true} : vector<8x1xf32> -> vector<8x1xf32>
    %77 = vector.broadcast %76 : vector<8x1xf32> to vector<8x8xf32>
    %78 = arith.mulf %73, %77 : vector<8x8xf32>
    %cst_45 = arith.constant dense<0.000000e+00> : vector<8x8xf32>
    %79 = tpu.matmul %78, %65, %cst_45 {dimension_numbers = #tpu.dot_dimension_numbers<[1], [0], [0], [1], [0, 0, 1, 1], [], []>} : vector<8x8xf32>, vector<8x8xf32>, vector<8x8xf32> -> vector<8x8xf32>
    %80 = vector.extract_strided_slice %27 {offsets = [0, 24], sizes = [8, 8], strides = [1, 1]} : vector<16x96xf32> to vector<8x8xf32>
    %81 = vector.extract_strided_slice %27 {offsets = [0, 56], sizes = [8, 8], strides = [1, 1]} : vector<16x96xf32> to vector<8x8xf32>
    %82 = vector.extract_strided_slice %27 {offsets = [0, 88], sizes = [8, 8], strides = [1, 1]} : vector<16x96xf32> to vector<8x8xf32>
    %cst_46 = arith.constant dense<0.000000e+00> : vector<8x8xf32>
    %83 = tpu.matmul %80, %81, %cst_46 {dimension_numbers = #tpu.dot_dimension_numbers<[1], [1], [0], [0], [0, 0, 1, 0], [], []>} : vector<8x8xf32>, vector<8x8xf32>, vector<8x8xf32> -> vector<8x8xf32>
    %84 = vector.broadcast %28 : vector<1x8xf32> to vector<8x8xf32>
    %85 = arith.addf %83, %84 : vector<8x8xf32>
    %cst_47 = arith.constant dense<0xFF800000> : vector<8xf32>
    %86 = vector.multi_reduction <maximumf>, %85, %cst_47 [1] : vector<8x8xf32> to vector<8xf32>
    %87 = vector.shape_cast %86 : vector<8xf32> to vector<8x1xf32>
    %88 = vector.broadcast %87 : vector<8x1xf32> to vector<8x8xf32>
    %89 = arith.subf %85, %88 : vector<8x8xf32>
    %90 = math.exp %89 : vector<8x8xf32>
    %cst_48 = arith.constant dense<0.000000e+00> : vector<8xf32>
    %91 = vector.multi_reduction <add>, %90, %cst_48 [1] : vector<8x8xf32> to vector<8xf32>
    %92 = vector.shape_cast %91 : vector<8xf32> to vector<8x1xf32>
    %93 = tpu.reciprocal %92 {approx = true} : vector<8x1xf32> -> vector<8x1xf32>
    %94 = vector.broadcast %93 : vector<8x1xf32> to vector<8x8xf32>
    %95 = arith.mulf %90, %94 : vector<8x8xf32>
    %cst_49 = arith.constant dense<0.000000e+00> : vector<8x8xf32>
    %96 = tpu.matmul %95, %82, %cst_49 {dimension_numbers = #tpu.dot_dimension_numbers<[1], [0], [0], [1], [0, 0, 1, 1], [], []>} : vector<8x8xf32>, vector<8x8xf32>, vector<8x8xf32> -> vector<8x8xf32>
    %97 = tpu.concatenate %45, %62, %79, %96 in 1 : vector<8x8xf32>, vector<8x8xf32>, vector<8x8xf32>, vector<8x8xf32> -> vector<8x32xf32>
    %98 = vector.extract_strided_slice %4 {offsets = [1, 0], sizes = [1, 8], strides = [1, 1]} : vector<2x8xf32> to vector<1x8xf32>
    %99 = vector.extract_strided_slice %27 {offsets = [8, 0], sizes = [8, 8], strides = [1, 1]} : vector<16x96xf32> to vector<8x8xf32>
    %100 = vector.extract_strided_slice %27 {offsets = [8, 32], sizes = [8, 8], strides = [1, 1]} : vector<16x96xf32> to vector<8x8xf32>
    %101 = vector.extract_strided_slice %27 {offsets = [8, 64], sizes = [8, 8], strides = [1, 1]} : vector<16x96xf32> to vector<8x8xf32>
    %cst_50 = arith.constant dense<0.000000e+00> : vector<8x8xf32>
    %102 = tpu.matmul %99, %100, %cst_50 {dimension_numbers = #tpu.dot_dimension_numbers<[1], [1], [0], [0], [0, 0, 1, 0], [], []>} : vector<8x8xf32>, vector<8x8xf32>, vector<8x8xf32> -> vector<8x8xf32>
    %103 = vector.broadcast %98 : vector<1x8xf32> to vector<8x8xf32>
    %104 = arith.addf %102, %103 : vector<8x8xf32>
    %cst_51 = arith.constant dense<0xFF800000> : vector<8xf32>
    %105 = vector.multi_reduction <maximumf>, %104, %cst_51 [1] : vector<8x8xf32> to vector<8xf32>
    %106 = vector.shape_cast %105 : vector<8xf32> to vector<8x1xf32>
    %107 = vector.broadcast %106 : vector<8x1xf32> to vector<8x8xf32>
    %108 = arith.subf %104, %107 : vector<8x8xf32>
    %109 = math.exp %108 : vector<8x8xf32>
    %cst_52 = arith.constant dense<0.000000e+00> : vector<8xf32>
    %110 = vector.multi_reduction <add>, %109, %cst_52 [1] : vector<8x8xf32> to vector<8xf32>
    %111 = vector.shape_cast %110 : vector<8xf32> to vector<8x1xf32>
    %112 = tpu.reciprocal %111 {approx = true} : vector<8x1xf32> -> vector<8x1xf32>
    %113 = vector.broadcast %112 : vector<8x1xf32> to vector<8x8xf32>
    %114 = arith.mulf %109, %113 : vector<8x8xf32>
    %cst_53 = arith.constant dense<0.000000e+00> : vector<8x8xf32>
    %115 = tpu.matmul %114, %101, %cst_53 {dimension_numbers = #tpu.dot_dimension_numbers<[1], [0], [0], [1], [0, 0, 1, 1], [], []>} : vector<8x8xf32>, vector<8x8xf32>, vector<8x8xf32> -> vector<8x8xf32>
    %116 = vector.extract_strided_slice %27 {offsets = [8, 8], sizes = [8, 8], strides = [1, 1]} : vector<16x96xf32> to vector<8x8xf32>
    %117 = vector.extract_strided_slice %27 {offsets = [8, 40], sizes = [8, 8], strides = [1, 1]} : vector<16x96xf32> to vector<8x8xf32>
    %118 = vector.extract_strided_slice %27 {offsets = [8, 72], sizes = [8, 8], strides = [1, 1]} : vector<16x96xf32> to vector<8x8xf32>
    %cst_54 = arith.constant dense<0.000000e+00> : vector<8x8xf32>
    %119 = tpu.matmul %116, %117, %cst_54 {dimension_numbers = #tpu.dot_dimension_numbers<[1], [1], [0], [0], [0, 0, 1, 0], [], []>} : vector<8x8xf32>, vector<8x8xf32>, vector<8x8xf32> -> vector<8x8xf32>
    %120 = vector.broadcast %98 : vector<1x8xf32> to vector<8x8xf32>
    %121 = arith.addf %119, %120 : vector<8x8xf32>
    %cst_55 = arith.constant dense<0xFF800000> : vector<8xf32>
    %122 = vector.multi_reduction <maximumf>, %121, %cst_55 [1] : vector<8x8xf32> to vector<8xf32>
    %123 = vector.shape_cast %122 : vector<8xf32> to vector<8x1xf32>
    %124 = vector.broadcast %123 : vector<8x1xf32> to vector<8x8xf32>
    %125 = arith.subf %121, %124 : vector<8x8xf32>
    %126 = math.exp %125 : vector<8x8xf32>
    %cst_56 = arith.constant dense<0.000000e+00> : vector<8xf32>
    %127 = vector.multi_reduction <add>, %126, %cst_56 [1] : vector<8x8xf32> to vector<8xf32>
    %128 = vector.shape_cast %127 : vector<8xf32> to vector<8x1xf32>
    %129 = tpu.reciprocal %128 {approx = true} : vector<8x1xf32> -> vector<8x1xf32>
    %130 = vector.broadcast %129 : vector<8x1xf32> to vector<8x8xf32>
    %131 = arith.mulf %126, %130 : vector<8x8xf32>
    %cst_57 = arith.constant dense<0.000000e+00> : vector<8x8xf32>
    %132 = tpu.matmul %131, %118, %cst_57 {dimension_numbers = #tpu.dot_dimension_numbers<[1], [0], [0], [1], [0, 0, 1, 1], [], []>} : vector<8x8xf32>, vector<8x8xf32>, vector<8x8xf32> -> vector<8x8xf32>
    %133 = vector.extract_strided_slice %27 {offsets = [8, 16], sizes = [8, 8], strides = [1, 1]} : vector<16x96xf32> to vector<8x8xf32>
    %134 = vector.extract_strided_slice %27 {offsets = [8, 48], sizes = [8, 8], strides = [1, 1]} : vector<16x96xf32> to vector<8x8xf32>
    %135 = vector.extract_strided_slice %27 {offsets = [8, 80], sizes = [8, 8], strides = [1, 1]} : vector<16x96xf32> to vector<8x8xf32>
    %cst_58 = arith.constant dense<0.000000e+00> : vector<8x8xf32>
    %136 = tpu.matmul %133, %134, %cst_58 {dimension_numbers = #tpu.dot_dimension_numbers<[1], [1], [0], [0], [0, 0, 1, 0], [], []>} : vector<8x8xf32>, vector<8x8xf32>, vector<8x8xf32> -> vector<8x8xf32>
    %137 = vector.broadcast %98 : vector<1x8xf32> to vector<8x8xf32>
    %138 = arith.addf %136, %137 : vector<8x8xf32>
    %cst_59 = arith.constant dense<0xFF800000> : vector<8xf32>
    %139 = vector.multi_reduction <maximumf>, %138, %cst_59 [1] : vector<8x8xf32> to vector<8xf32>
    %140 = vector.shape_cast %139 : vector<8xf32> to vector<8x1xf32>
    %141 = vector.broadcast %140 : vector<8x1xf32> to vector<8x8xf32>
    %142 = arith.subf %138, %141 : vector<8x8xf32>
    %143 = math.exp %142 : vector<8x8xf32>
    %cst_60 = arith.constant dense<0.000000e+00> : vector<8xf32>
    %144 = vector.multi_reduction <add>, %143, %cst_60 [1] : vector<8x8xf32> to vector<8xf32>
    %145 = vector.shape_cast %144 : vector<8xf32> to vector<8x1xf32>
    %146 = tpu.reciprocal %145 {approx = true} : vector<8x1xf32> -> vector<8x1xf32>
    %147 = vector.broadcast %146 : vector<8x1xf32> to vector<8x8xf32>
    %148 = arith.mulf %143, %147 : vector<8x8xf32>
    %cst_61 = arith.constant dense<0.000000e+00> : vector<8x8xf32>
    %149 = tpu.matmul %148, %135, %cst_61 {dimension_numbers = #tpu.dot_dimension_numbers<[1], [0], [0], [1], [0, 0, 1, 1], [], []>} : vector<8x8xf32>, vector<8x8xf32>, vector<8x8xf32> -> vector<8x8xf32>
    %150 = vector.extract_strided_slice %27 {offsets = [8, 24], sizes = [8, 8], strides = [1, 1]} : vector<16x96xf32> to vector<8x8xf32>
    %151 = vector.extract_strided_slice %27 {offsets = [8, 56], sizes = [8, 8], strides = [1, 1]} : vector<16x96xf32> to vector<8x8xf32>
    %152 = vector.extract_strided_slice %27 {offsets = [8, 88], sizes = [8, 8], strides = [1, 1]} : vector<16x96xf32> to vector<8x8xf32>
    %cst_62 = arith.constant dense<0.000000e+00> : vector<8x8xf32>
    %153 = tpu.matmul %150, %151, %cst_62 {dimension_numbers = #tpu.dot_dimension_numbers<[1], [1], [0], [0], [0, 0, 1, 0], [], []>} : vector<8x8xf32>, vector<8x8xf32>, vector<8x8xf32> -> vector<8x8xf32>
    %154 = vector.broadcast %98 : vector<1x8xf32> to vector<8x8xf32>
    %155 = arith.addf %153, %154 : vector<8x8xf32>
    %cst_63 = arith.constant dense<0xFF800000> : vector<8xf32>
    %156 = vector.multi_reduction <maximumf>, %155, %cst_63 [1] : vector<8x8xf32> to vector<8xf32>
    %157 = vector.shape_cast %156 : vector<8xf32> to vector<8x1xf32>
    %158 = vector.broadcast %157 : vector<8x1xf32> to vector<8x8xf32>
    %159 = arith.subf %155, %158 : vector<8x8xf32>
    %160 = math.exp %159 : vector<8x8xf32>
    %cst_64 = arith.constant dense<0.000000e+00> : vector<8xf32>
    %161 = vector.multi_reduction <add>, %160, %cst_64 [1] : vector<8x8xf32> to vector<8xf32>
    %162 = vector.shape_cast %161 : vector<8xf32> to vector<8x1xf32>
    %163 = tpu.reciprocal %162 {approx = true} : vector<8x1xf32> -> vector<8x1xf32>
    %164 = vector.broadcast %163 : vector<8x1xf32> to vector<8x8xf32>
    %165 = arith.mulf %160, %164 : vector<8x8xf32>
    %cst_65 = arith.constant dense<0.000000e+00> : vector<8x8xf32>
    %166 = tpu.matmul %165, %152, %cst_65 {dimension_numbers = #tpu.dot_dimension_numbers<[1], [0], [0], [1], [0, 0, 1, 1], [], []>} : vector<8x8xf32>, vector<8x8xf32>, vector<8x8xf32> -> vector<8x8xf32>
    %167 = tpu.concatenate %115, %132, %149, %166 in 1 : vector<8x8xf32>, vector<8x8xf32>, vector<8x8xf32>, vector<8x8xf32> -> vector<8x32xf32>
    %168 = tpu.concatenate %97, %167 in 0 : vector<8x32xf32>, vector<8x32xf32> -> vector<16x32xf32>
    %cst_66 = arith.constant dense<0.000000e+00> : vector<16x32xf32>
    %169 = tpu.matmul %168, %8, %cst_66 {dimension_numbers = #tpu.dot_dimension_numbers<[1], [0], [0], [1], [0, 0, 1, 1], [], []>} : vector<16x32xf32>, vector<32x32xf32>, vector<16x32xf32> -> vector<16x32xf32>
    %170 = vector.broadcast %10 : vector<1x32xf32> to vector<16x32xf32>
    %171 = arith.addf %169, %170 : vector<16x32xf32>
    %172 = arith.addf %171, %3 : vector<16x32xf32>
    %cst_67 = arith.constant dense<0.000000e+00> : vector<16xf32>
    %173 = vector.multi_reduction <add>, %172, %cst_67 [1] : vector<16x32xf32> to vector<16xf32>
    %174 = vector.shape_cast %173 : vector<16xf32> to vector<16x1xf32>
    %cst_68 = arith.constant 3.200000e+01 : f32
    %175 = vector.broadcast %cst_68 : f32 to vector<16x1xf32>
    %176 = arith.divf %174, %175 : vector<16x1xf32>
    %177 = vector.broadcast %176 : vector<16x1xf32> to vector<16x32xf32>
    %178 = arith.subf %172, %177 : vector<16x32xf32>
    %179 = arith.mulf %178, %178 : vector<16x32xf32>
    %cst_69 = arith.constant dense<0.000000e+00> : vector<16xf32>
    %180 = vector.multi_reduction <add>, %179, %cst_69 [1] : vector<16x32xf32> to vector<16xf32>
    %181 = vector.shape_cast %180 : vector<16xf32> to vector<16x1xf32>
    %cst_70 = arith.constant 3.200000e+01 : f32
    %182 = vector.broadcast %cst_70 : f32 to vector<16x1xf32>
    %183 = arith.divf %181, %182 : vector<16x1xf32>
    %cst_71 = arith.constant 9.99999974E-6 : f32
    %184 = vector.broadcast %cst_71 : f32 to vector<16x1xf32>
    %185 = arith.addf %183, %184 : vector<16x1xf32>
    %186 = math.rsqrt %185 : vector<16x1xf32>
    %187 = vector.broadcast %186 : vector<16x1xf32> to vector<16x32xf32>
    %188 = arith.mulf %178, %187 : vector<16x32xf32>
    %189 = vector.broadcast %12 : vector<1x32xf32> to vector<16x32xf32>
    %190 = arith.mulf %188, %189 : vector<16x32xf32>
    %191 = vector.broadcast %14 : vector<1x32xf32> to vector<16x32xf32>
    %192 = arith.addf %190, %191 : vector<16x32xf32>
    %c0_72 = arith.constant 0 : index
    %c0_73 = arith.constant 0 : index
    %c0_74 = arith.constant 0 : index
    %193 = vector.load %arg11[%c0_72, %c0_73, %c0_74] : memref<1x32x64xf32, #tpu.memory_space<vmem>>, vector<1x32x64xf32>
    %194 = vector.shape_cast %193 : vector<1x32x64xf32> to vector<32x64xf32>
    %cst_75 = arith.constant dense<0.000000e+00> : vector<16x64xf32>
    %195 = tpu.matmul %192, %194, %cst_75 {dimension_numbers = #tpu.dot_dimension_numbers<[1], [0], [0], [1], [0, 0, 1, 1], [], []>} : vector<16x32xf32>, vector<32x64xf32>, vector<16x64xf32> -> vector<16x64xf32>
    %196 = vector.broadcast %16 : vector<1x64xf32> to vector<16x64xf32>
    %197 = arith.addf %195, %196 : vector<16x64xf32>
    %cst_76 = arith.constant 5.000000e-01 : f32
    %198 = vector.broadcast %cst_76 : f32 to vector<16x64xf32>
    %199 = arith.mulf %198, %197 : vector<16x64xf32>
    %cst_77 = arith.constant 0.707106769 : f32
    %200 = vector.broadcast %cst_77 : f32 to vector<16x64xf32>
    %201 = arith.mulf %197, %200 : vector<16x64xf32>
    %202 = math.erf %201 : vector<16x64xf32>
    %cst_78 = arith.constant 1.000000e+00 : f32
    %203 = vector.broadcast %cst_78 : f32 to vector<16x64xf32>
    %204 = arith.addf %203, %202 : vector<16x64xf32>
    %205 = arith.mulf %199, %204 : vector<16x64xf32>
    %c0_79 = arith.constant 0 : index
    %c0_80 = arith.constant 0 : index
    %c0_81 = arith.constant 0 : index
    %206 = vector.load %arg13[%c0_79, %c0_80, %c0_81] : memref<1x64x32xf32, #tpu.memory_space<vmem>>, vector<1x64x32xf32>
    %207 = vector.shape_cast %206 : vector<1x64x32xf32> to vector<64x32xf32>
    %cst_82 = arith.constant dense<0.000000e+00> : vector<16x32xf32>
    %208 = tpu.matmul %205, %207, %cst_82 {dimension_numbers = #tpu.dot_dimension_numbers<[1], [0], [0], [1], [0, 0, 1, 1], [], []>} : vector<16x64xf32>, vector<64x32xf32>, vector<16x32xf32> -> vector<16x32xf32>
    %209 = vector.broadcast %18 : vector<1x32xf32> to vector<16x32xf32>
    %210 = arith.addf %208, %209 : vector<16x32xf32>
    %211 = arith.addf %210, %192 : vector<16x32xf32>
    %cst_83 = arith.constant dense<0.000000e+00> : vector<16xf32>
    %212 = vector.multi_reduction <add>, %211, %cst_83 [1] : vector<16x32xf32> to vector<16xf32>
    %213 = vector.shape_cast %212 : vector<16xf32> to vector<16x1xf32>
    %cst_84 = arith.constant 3.200000e+01 : f32
    %214 = vector.broadcast %cst_84 : f32 to vector<16x1xf32>
    %215 = arith.divf %213, %214 : vector<16x1xf32>
    %216 = vector.broadcast %215 : vector<16x1xf32> to vector<16x32xf32>
    %217 = arith.subf %211, %216 : vector<16x32xf32>
    %218 = arith.mulf %217, %217 : vector<16x32xf32>
    %cst_85 = arith.constant dense<0.000000e+00> : vector<16xf32>
    %219 = vector.multi_reduction <add>, %218, %cst_85 [1] : vector<16x32xf32> to vector<16xf32>
    %220 = vector.shape_cast %219 : vector<16xf32> to vector<16x1xf32>
    %cst_86 = arith.constant 3.200000e+01 : f32
    %221 = vector.broadcast %cst_86 : f32 to vector<16x1xf32>
    %222 = arith.divf %220, %221 : vector<16x1xf32>
    %cst_87 = arith.constant 9.99999974E-6 : f32
    %223 = vector.broadcast %cst_87 : f32 to vector<16x1xf32>
    %224 = arith.addf %222, %223 : vector<16x1xf32>
    %225 = math.rsqrt %224 : vector<16x1xf32>
    %226 = vector.broadcast %225 : vector<16x1xf32> to vector<16x32xf32>
    %227 = arith.mulf %217, %226 : vector<16x32xf32>
    %228 = vector.broadcast %20 : vector<1x32xf32> to vector<16x32xf32>
    %229 = arith.mulf %227, %228 : vector<16x32xf32>
    %230 = vector.broadcast %22 : vector<1x32xf32> to vector<16x32xf32>
    %231 = arith.addf %229, %230 : vector<16x32xf32>
    %c0_88 = arith.constant 0 : index
    %c0_89 = arith.constant 0 : index
    %232 = vector.load %arg24[%c0_88, %c0_89] : memref<16x32xf32, #tpu.memory_space<vmem>>, vector<16x32xf32>
    tpu.vector_store %arg24[%c0_88, %c0_89], %231 {strides = array<i32>} : memref<16x32xf32, #tpu.memory_space<vmem>>, vector<16x32xf32>,
    %c1_i32 = arith.constant 1 : i32
    %233 = arith.cmpi eq, %arg0, %c1_i32 : i32
    %234 = arith.extui %233 : i1 to i32
    %c0_i32_90 = arith.constant 0 : i32
    %235 = arith.cmpi ne, %234, %c0_i32_90 : i32
    scf.if %235 {
      %c0_91 = arith.constant 0 : index
      %c0_92 = arith.constant 0 : index
      %236 = vector.load %arg17[%c0_91, %c0_92] : memref<32x32xf32, #tpu.memory_space<vmem>>, vector<32x32xf32>
      %cst_93 = arith.constant dense<0.000000e+00> : vector<16x32xf32>
      %237 = tpu.matmul %231, %236, %cst_93 {dimension_numbers = #tpu.dot_dimension_numbers<[1], [0], [0], [1], [0, 0, 1, 1], [], []>} : vector<16x32xf32>, vector<32x32xf32>, vector<16x32xf32> -> vector<16x32xf32>
      %c0_94 = arith.constant 0 : index
      %c0_95 = arith.constant 0 : index
      %238 = vector.load %arg18[%c0_94, %c0_95] : memref<1x32xf32, #tpu.memory_space<vmem>>, vector<1x32xf32>
      %239 = vector.broadcast %238 : vector<1x32xf32> to vector<16x32xf32>
      %240 = arith.addf %237, %239 : vector<16x32xf32>
      %cst_96 = arith.constant 5.000000e-01 : f32
      %241 = vector.broadcast %cst_96 : f32 to vector<16x32xf32>
      %242 = arith.mulf %241, %240 : vector<16x32xf32>
      %cst_97 = arith.constant 0.707106769 : f32
      %243 = vector.broadcast %cst_97 : f32 to vector<16x32xf32>
      %244 = arith.mulf %240, %243 : vector<16x32xf32>
      %245 = math.erf %244 : vector<16x32xf32>
      %cst_98 = arith.constant 1.000000e+00 : f32
      %246 = vector.broadcast %cst_98 : f32 to vector<16x32xf32>
      %247 = arith.addf %246, %245 : vector<16x32xf32>
      %248 = arith.mulf %242, %247 : vector<16x32xf32>
      %c0_99 = arith.constant 0 : index
      %c0_100 = arith.constant 0 : index
      %249 = vector.load %arg19[%c0_99, %c0_100] : memref<1x32xf32, #tpu.memory_space<vmem>>, vector<1x32xf32>
      %c0_101 = arith.constant 0 : index
      %c0_102 = arith.constant 0 : index
      %250 = vector.load %arg20[%c0_101, %c0_102] : memref<1x32xf32, #tpu.memory_space<vmem>>, vector<1x32xf32>
      %cst_103 = arith.constant dense<0.000000e+00> : vector<16xf32>
      %251 = vector.multi_reduction <add>, %248, %cst_103 [1] : vector<16x32xf32> to vector<16xf32>
      %252 = vector.shape_cast %251 : vector<16xf32> to vector<16x1xf32>
      %cst_104 = arith.constant 3.200000e+01 : f32
      %253 = vector.broadcast %cst_104 : f32 to vector<16x1xf32>
      %254 = arith.divf %252, %253 : vector<16x1xf32>
      %255 = vector.broadcast %254 : vector<16x1xf32> to vector<16x32xf32>
      %256 = arith.subf %248, %255 : vector<16x32xf32>
      %257 = arith.mulf %256, %256 : vector<16x32xf32>
      %cst_105 = arith.constant dense<0.000000e+00> : vector<16xf32>
      %258 = vector.multi_reduction <add>, %257, %cst_105 [1] : vector<16x32xf32> to vector<16xf32>
      %259 = vector.shape_cast %258 : vector<16xf32> to vector<16x1xf32>
      %cst_106 = arith.constant 3.200000e+01 : f32
      %260 = vector.broadcast %cst_106 : f32 to vector<16x1xf32>
      %261 = arith.divf %259, %260 : vector<16x1xf32>
      %cst_107 = arith.constant 9.99999974E-6 : f32
      %262 = vector.broadcast %cst_107 : f32 to vector<16x1xf32>
      %263 = arith.addf %261, %262 : vector<16x1xf32>
      %264 = math.rsqrt %263 : vector<16x1xf32>
      %265 = vector.broadcast %264 : vector<16x1xf32> to vector<16x32xf32>
      %266 = arith.mulf %256, %265 : vector<16x32xf32>
      %267 = vector.broadcast %249 : vector<1x32xf32> to vector<16x32xf32>
      %268 = arith.mulf %266, %267 : vector<16x32xf32>
      %269 = vector.broadcast %250 : vector<1x32xf32> to vector<16x32xf32>
      %270 = arith.addf %268, %269 : vector<16x32xf32>
      %c0_108 = arith.constant 0 : index
      %c0_109 = arith.constant 0 : index
      %271 = vector.load %arg21[%c0_108, %c0_109] : memref<32x128xf32, #tpu.memory_space<vmem>>, vector<32x128xf32>
      %cst_110 = arith.constant dense<0.000000e+00> : vector<16x128xf32>
      %272 = tpu.matmul %270, %271, %cst_110 {dimension_numbers = #tpu.dot_dimension_numbers<[1], [0], [0], [1], [0, 0, 1, 1], [], []>} : vector<16x32xf32>, vector<32x128xf32>, vector<16x128xf32> -> vector<16x128xf32>
      %c0_111 = arith.constant 0 : index
      %c0_112 = arith.constant 0 : index
      %273 = vector.load %arg22[%c0_111, %c0_112] : memref<1x128xf32, #tpu.memory_space<vmem>>, vector<1x128xf32>
      %274 = vector.broadcast %273 : vector<1x128xf32> to vector<16x128xf32>
      %275 = arith.addf %272, %274 : vector<16x128xf32>
      %c0_113 = arith.constant 0 : index
      %c0_114 = arith.constant 0 : index
      %276 = vector.load %arg23[%c0_113, %c0_114] : memref<16x128xf32, #tpu.memory_space<vmem>>, vector<16x128xf32>
      tpu.vector_store %arg23[%c0_113, %c0_114], %275 {strides = array<i32>} : memref<16x128xf32, #tpu.memory_space<vmem>>, vector<16x128xf32>,
    } else {
    }
    return
  }
  func.func @transform_0(%arg0: i32) -> (i32, i32) {
    %c0_i32 = arith.constant 0 : i32
    %c0_i32_0 = arith.constant 0 : i32
    %c0_i32_1 = arith.constant 0 : i32
    return %c0_i32, %c0_i32_0 : i32, i32
  }
  func.func @transform_1(%arg0: i32) -> (i32, i32) {
    %c0_i32 = arith.constant 0 : i32
    %c0_i32_0 = arith.constant 0 : i32
    %c0_i32_1 = arith.constant 0 : i32
    return %c0_i32, %c0_i32_0 : i32, i32
  }
  func.func @transform_2(%arg0: i32) -> (i32, i32) {
    %c0_i32 = arith.constant 0 : i32
    %c0_i32_0 = arith.constant 0 : i32
    %c0_i32_1 = arith.constant 0 : i32
    return %c0_i32, %c0_i32_0 : i32, i32
  }
  func.func @transform_3(%arg0: i32) -> (i32, i32) {
    %c0_i32 = arith.constant 0 : i32
    %c0_i32_0 = arith.constant 0 : i32
    %c0_i32_1 = arith.constant 0 : i32
    return %c0_i32, %c0_i32_0 : i32, i32
  }
  func.func @transform_4(%arg0: i32) -> (i32, i32, i32) {
    %c0_i32 = arith.constant 0 : i32
    %c0_i32_0 = arith.constant 0 : i32
    %c0_i32_1 = arith.constant 0 : i32
    return %arg0, %c0_i32, %c0_i32_0 : i32, i32, i32
  }
  func.func @transform_5(%arg0: i32) -> (i32, i32, i32) {
    %c0_i32 = arith.constant 0 : i32
    %c0_i32_0 = arith.constant 0 : i32
    %c0_i32_1 = arith.constant 0 : i32
    return %arg0, %c0_i32, %c0_i32_0 : i32, i32, i32
  }
  func.func @transform_6(%arg0: i32) -> (i32, i32, i32) {
    %c0_i32 = arith.constant 0 : i32
    %c0_i32_0 = arith.constant 0 : i32
    %c0_i32_1 = arith.constant 0 : i32
    return %arg0, %c0_i32, %c0_i32_0 : i32, i32, i32
  }
  func.func @transform_7(%arg0: i32) -> (i32, i32, i32) {
    %c0_i32 = arith.constant 0 : i32
    %c0_i32_0 = arith.constant 0 : i32
    %c0_i32_1 = arith.constant 0 : i32
    return %arg0, %c0_i32, %c0_i32_0 : i32, i32, i32
  }
  func.func @transform_8(%arg0: i32) -> (i32, i32, i32) {
    %c0_i32 = arith.constant 0 : i32
    %c0_i32_0 = arith.constant 0 : i32
    %c0_i32_1 = arith.constant 0 : i32
    return %arg0, %c0_i32, %c0_i32_0 : i32, i32, i32
  }
  func.func @transform_9(%arg0: i32) -> (i32, i32, i32) {
    %c0_i32 = arith.constant 0 : i32
    %c0_i32_0 = arith.constant 0 : i32
    %c0_i32_1 = arith.constant 0 : i32
    return %arg0, %c0_i32, %c0_i32_0 : i32, i32, i32
  }
  func.func @transform_10(%arg0: i32) -> (i32, i32, i32) {
    %c0_i32 = arith.constant 0 : i32
    %c0_i32_0 = arith.constant 0 : i32
    %c0_i32_1 = arith.constant 0 : i32
    return %arg0, %c0_i32, %c0_i32_0 : i32, i32, i32
  }
  func.func @transform_11(%arg0: i32) -> (i32, i32, i32) {
    %c0_i32 = arith.constant 0 : i32
    %c0_i32_0 = arith.constant 0 : i32
    %c0_i32_1 = arith.constant 0 : i32
    return %arg0, %c0_i32, %c0_i32_0 : i32, i32, i32
  }
  func.func @transform_12(%arg0: i32) -> (i32, i32, i32) {
    %c0_i32 = arith.constant 0 : i32
    %c0_i32_0 = arith.constant 0 : i32
    %c0_i32_1 = arith.constant 0 : i32
    return %arg0, %c0_i32, %c0_i32_0 : i32, i32, i32
  }
  func.func @transform_13(%arg0: i32) -> (i32, i32, i32) {
    %c0_i32 = arith.constant 0 : i32
    %c0_i32_0 = arith.constant 0 : i32
    %c0_i32_1 = arith.constant 0 : i32
    return %arg0, %c0_i32, %c0_i32_0 : i32, i32, i32
  }
  func.func @transform_14(%arg0: i32) -> (i32, i32, i32) {
    %c0_i32 = arith.constant 0 : i32
    %c0_i32_0 = arith.constant 0 : i32
    %c0_i32_1 = arith.constant 0 : i32
    return %arg0, %c0_i32, %c0_i32_0 : i32, i32, i32
  }
  func.func @transform_15(%arg0: i32) -> (i32, i32, i32) {
    %c0_i32 = arith.constant 0 : i32
    %c0_i32_0 = arith.constant 0 : i32
    %c0_i32_1 = arith.constant 0 : i32
    return %arg0, %c0_i32, %c0_i32_0 : i32, i32, i32
  }
  func.func @transform_16(%arg0: i32) -> (i32, i32) {
    %c0_i32 = arith.constant 0 : i32
    %c0_i32_0 = arith.constant 0 : i32
    %c0_i32_1 = arith.constant 0 : i32
    return %c0_i32, %c0_i32_0 : i32, i32
  }
  func.func @transform_17(%arg0: i32) -> (i32, i32) {
    %c0_i32 = arith.constant 0 : i32
    %c0_i32_0 = arith.constant 0 : i32
    %c0_i32_1 = arith.constant 0 : i32
    return %c0_i32, %c0_i32_0 : i32, i32
  }
  func.func @transform_18(%arg0: i32) -> (i32, i32) {
    %c0_i32 = arith.constant 0 : i32
    %c0_i32_0 = arith.constant 0 : i32
    %c0_i32_1 = arith.constant 0 : i32
    return %c0_i32, %c0_i32_0 : i32, i32
  }
  func.func @transform_19(%arg0: i32) -> (i32, i32) {
    %c0_i32 = arith.constant 0 : i32
    %c0_i32_0 = arith.constant 0 : i32
    %c0_i32_1 = arith.constant 0 : i32
    return %c0_i32, %c0_i32_0 : i32, i32
  }
  func.func @transform_20(%arg0: i32) -> (i32, i32) {
    %c0_i32 = arith.constant 0 : i32
    %c0_i32_0 = arith.constant 0 : i32
    %c0_i32_1 = arith.constant 0 : i32
    return %c0_i32, %c0_i32_0 : i32, i32
  }
  func.func @transform_21(%arg0: i32) -> (i32, i32) {
    %c0_i32 = arith.constant 0 : i32
    %c0_i32_0 = arith.constant 0 : i32
    %c0_i32_1 = arith.constant 0 : i32
    return %c0_i32, %c0_i32_0 : i32, i32
  }
  func.func @transform_22(%arg0: i32) -> (i32, i32) {
    %c0_i32 = arith.constant 0 : i32
    %c0_i32_0 = arith.constant 0 : i32
    %c0_i32_1 = arith.constant 0 : i32
    return %c0_i32, %c0_i32_0 : i32, i32
  }
}

</mosaic_0001>

<bundles_post_ra>
// kernel: xlm_roberta_forward.1
= control target key start
LH: loop header
LB: loop body
LE: loop exit
PB: predicated region body
PF: predicated region fallthrough
CT: control target
= control target key end

     0   :  { %s4060_s0 = inlined_call_operand.vmem [shape: f32[16,32], index: 0, kind: input, shape index: {}]   ;;  %s4061_s1 = inlined_call_operand.vmem [shape: f32[2,8], index: 1, kind: input, shape index: {}]   ;;  %s4062_s2 = inlined_call_operand.vmem [shape: f32[1,32], index: 2, kind: input, shape index: {}]   ;;  %s4063_s3 = inlined_call_operand.vmem [shape: f32[1,32], index: 3, kind: input, shape index: {}]   ;;  %s4064_s4 = inlined_call_operand.vmem [shape: f32[2,32,96], index: 4, kind: input, shape index: {}]   ;;  %s4065_s5 = inlined_call_operand.vmem [shape: f32[2,1,96], index: 5, kind: input, shape index: {}]   ;;  %s4066_s6 = inlined_call_operand.vmem [shape: f32[2,32,32], index: 6, kind: input, shape index: {}]   ;;  %s4067_s7 = inlined_call_operand.vmem [shape: f32[2,1,32], index: 7, kind: input, shape index: {}]   ;;  %s4068_s8 = inlined_call_operand.vmem [shape: f32[2,1,32], index: 8, kind: input, shape index: {}]   ;;  %s4069_s9 = inlined_call_operand.vmem [shape: f32[2,1,32], index: 9, kind: input, shape index: {}]   ;;  %s4070_s10 = inlined_call_operand.vmem [shape: f32[2,32,64], index: 10, kind: input, shape index: {}]   ;;  %s4071_s11 = inlined_call_operand.vmem [shape: f32[2,1,64], index: 11, kind: input, shape index: {}]   ;;  %s4072_s12 = inlined_call_operand.vmem [shape: f32[2,64,32], index: 12, kind: input, shape index: {}]   ;;  %s4073_s13 = inlined_call_operand.vmem [shape: f32[2,1,32], index: 13, kind: input, shape index: {}]   ;;  %s4074_s14 = inlined_call_operand.vmem [shape: f32[2,1,32], index: 14, kind: input, shape index: {}]   ;;  %s4075_s15 = inlined_call_operand.vmem [shape: f32[2,1,32], index: 15, kind: input, shape index: {}]   ;;  %s4076_s16 = inlined_call_operand.vmem [shape: f32[32,32], index: 16, kind: input, shape index: {}]   ;;  %s4077_s17 = inlined_call_operand.vmem [shape: f32[1,32], index: 17, kind: input, shape index: {}]   ;;  %s4078_s18 = inlined_call_operand.vmem [shape: f32[1,32], index: 18, kind: input, shape index: {}]   ;;  %s4079_s19 = inlined_call_operand.vmem [shape: f32[1,32], index: 19, kind: input, shape index: {}]   ;;  %s4080_s20 = inlined_call_operand.vmem [shape: f32[32,128], index: 20, kind: input, shape index: {}]   ;;  %s4081_s21 = inlined_call_operand.vmem [shape: f32[1,128], index: 21, kind: input, shape index: {}]   ;;  %s4082_s22 = inlined_call_operand.vmem [shape: f32[16,128], index: 22, kind: output, shape index: {}]  }
   0x1   :  { %4087 = sst [smem:[#allocation4_spill]] %s4060_s0 }
   0x2   :  { %4088 = sst [smem:[#allocation5_spill]] %s4061_s1 }
   0x3   :  { %4089 = sst [smem:[#allocation6_spill]] %s4062_s2 }
   0x4   :  { %4090 = sst [smem:[#allocation7_spill]] %s4063_s3  ;;  %s3687_s3 = smov 0  }
   0x5   :  { %4091 = sst [smem:[#allocation8_spill]] %s4064_s4 }
   0x6   :  { %4092 = sst [smem:[#allocation9_spill]] %s4065_s5 }
   0x7   :  { %4093 = sst [smem:[#allocation10_spill]] %s4066_s6 }
   0x8   :  { %4094 = sst [smem:[#allocation11_spill]] %s4077_s17 }
   0x9   :  { %4095 = sst [smem:[#allocation12_spill]] %s4078_s18 }
   0xa   :  { %4096 = sst [smem:[#allocation13_spill]] %s4079_s19 }
   0xb   :  { %4097 = sst [smem:[#allocation14_spill]] %s4080_s20 }
   0xc   :  { %4098 = sst [smem:[#allocation15_spill]] %s4081_s21 }
   0xd   :  { %4099 = sst [smem:[#allocation16_spill]] %s4082_s22 }
   0xe LB: > { %4100 = sst [smem:[#allocation3_spill]] %s3554_s3  ;;  %s3693_s28 = sadd.s32 4294967295, %s3554_s3   ;;  %s3554_s3 = sphi %s3687_s3, %s32_s3  }
   0xf   : > { %p3119_p0 = scmp.ge.s32.totalorder %s3554_s3, 1  ;;  %p701_p1 = scmp.lt.s32.totalorder %s3554_s3, 3 }
  0x11   : > { %p702_p2 = pnand %p3119_p0, %p701_p1 }
  0x12   : > { %p797_p3 = scmp.lt.s32.totalorder (!%p702_p2), %s3693_s28, 1  ;;  %s4102_s6 = sld [smem:[#allocation8_spill]] (!%p702_p2) }
  0x13   : > { %705 = sbr.rel (%p702_p2) target bundleno = 3688 (0xe68), region = 108  ;;  %s4103_s27 = sld [smem:[#allocation10_spill]] (!%p702_p2) }
  0x14   : > { %p3128_p4 = scmp.ne.s32.totalorder (!%p702_p2), %s3693_s28, 0 }
  0x1a   : > { %s3699_s29 = scalar_select %p797_p3, %s3693_s28, 1 }
  0x1b   : > { %844 = sbr.rel (%p3128_p4) target bundleno = 352 (0x160), region = 112  ;;  %s4104_s21 = sld [smem:[#allocation4_spill]] (!%p3128_p4)  ;;  %vm849_vm0 = vcmask (!%p3128_p4), 261120  }
  0x1c   : > { %s3182_s30 = sshll.u32 %s3699_s29, 5  ;;  %s3185_s1 = sshll.u32 %s3699_s29, 6 }
  0x1d   : > { %s3709_s25 = scalar_lea.vmem %s4102_s6, %s3182_s30  ;;  %s3714_s3 = scalar_lea.vmem %s4103_s27, %s3182_s30 }
  0x1e   : > { %s3731_s6 = scalar_lea.vmem %s4070_s10, %s3182_s30  ;;  %s826_s27 = scalar_lea.vmem %s4071_s11, %s3699_s29 }
  0x1f   : > { %s3741_s19 = scalar_lea.vmem %s4072_s12, %s3185_s1  ;;  %s834_s4 = scalar_lea.vmem %s4073_s13, %s3699_s29 }
  0x20   : > { %s837_s5 = scalar_lea.vmem %s4074_s14, %s3699_s29  ;;  %s840_s17 = scalar_lea.vmem %s4075_s15, %s3699_s29 }
  0x21   : > { %v845_v0 = vld [vmem:[%s4104_s21] sm:$0xff] (!%p3128_p4)  ;;  %v846_v1 = vld [vmem:[%s4104_s21 + $0x8] sm:$0xff] (!%p3128_p4)  ;;  %s4105_s20 = sld [smem:[#allocation6_spill]] (!%p3128_p4)  ;;  %s4106_s24 = sld [smem:[#allocation7_spill]] (!%p3128_p4) }
  0x22   : > { %v850_v2 = vsel %vm849_vm0, %v845_v0, 0.0  ;;  %v853_v3 = vsel %vm849_vm0, %v846_v1, 0.0 }
  0x23   : > { %851 = vadd.xlane.f32.xlu0 %v850_v2 }
  0x27   : > { %854 = vadd.xlane.f32.xlu0 %v853_v3  ;;  %v3129_v21 = vld [vmem:[%s4105_s20] ss:$0 sm:$0xff] }
  0x28   : > { %v3130_v23 = vld [vmem:[%s4106_s24] ss:$0 sm:$0xff] }
  0xb0   : > { %v852_v4 = vpop.xlane.xlu0 %851 }
  0xb1   : > { %v857_v5 = vmul.f32 0.03125, %v852_v4 }
  0xb3   : > { %v859_v6 = vsub.f32 %v845_v0, %v857_v5 }
  0xb4   : > { %v855_v7 = vpop.xlane.xlu0 %854 }
  0xb5   : > { %v858_v8 = vmul.f32 0.03125, %v855_v7  ;;  %v861_v9 = vmul.f32 %v859_v6, %v859_v6 }
  0xb7   : > { %v860_v10 = vsub.f32 %v846_v1, %v858_v8  ;;  %v863_v11 = vsel %vm849_vm0, %v861_v9, 0.0 }
  0xb8   : > { %864 = vadd.xlane.f32.xlu1 %v863_v11 }
  0xb9   : > { %v862_v12 = vmul.f32 %v860_v10, %v860_v10 }
  0xbb   : > { %v866_v13 = vsel %vm849_vm0, %v862_v12, 0.0 }
  0xbc   : > { %867 = vadd.xlane.f32.xlu1 %v866_v13 }
 0x145   : > { %v865_v14 = vpop.xlane.xlu1 %864 }
 0x146   : > { %v869_v15 = vmul.f32 0.03125, %v865_v14 }
 0x148   : > { %v871_v16 = vadd.f32 1e-05, %v869_v15 }
 0x149   : > { %v868_v17 = vpop.xlane.xlu1 %867 }
 0x14a   : > { %3492 = vrsqrt.f32 %v871_v16  ;;  %v870_v18 = vmul.f32 0.03125, %v868_v17 }
 0x14c   : > { %v872_v19 = vadd.f32 1e-05, %v870_v18 }
 0x14e   : > { %3494 = vrsqrt.f32 %v872_v19 }
 0x154   : > { %v3493_v20 = vpop.eup %3492 }
 0x155   : > { %v875_v22 = vmul.f32 %v3493_v20, %v859_v6 }
 0x157   : > { %v883_v24 = vmul.f32 %v3129_v21, %v875_v22 }
 0x158   : > { %v3495_v25 = vpop.eup %3494 }
 0x159   : > { %v891_v26 = vadd.f32 %v3130_v23, %v883_v24  ;;  %v876_v27 = vmul.f32 %v3495_v25, %v860_v10 }
 0x15b   : > { %893 = vst.msk [vmem:[#allocation2] sm:$0xff] %vm849_vm0, %v891_v26  ;;  %v884_v28 = vmul.f32 %v3129_v21, %v876_v27 }
 0x15d   : > { %v892_v29 = vadd.f32 %v3130_v23, %v884_v28 }
 0x15f   : > { %894 = vst.msk [vmem:[#allocation2 + $0x8] sm:$0xff] %vm849_vm0, %v892_v29 }
 0x160 PF: > { %v910_v30 = vld [vmem:[%s3709_s25] sm:$0xff]  ;;  %v911_v31 = vld [vmem:[%s3709_s25 + $0x8] sm:$0xff]  ;;  %v912_v32 = vld [vmem:[%s3709_s25 + $0x10] sm:$0xff]  ;;  %vm920_vm1 = vcmask 261120   ;;  %v3556_v38 = vmov 0.0   ;;  %vm3557_vm2 = vmmov 0   ;;  %v1002_v59 = vlaneseq }
 0x161   : > { %v3412_v33 = vpack.c.bf16 %v911_v31, %v910_v30  ;;  %v913_v34 = vld [vmem:[%s3709_s25 + $0x18] sm:$0xff]  ;;  %3279 = vmatprep.subr.mxu0 %v3556_v38  ;;  %3281 = vmatprep.mubr.msk.f32.mxu0 %vm3557_vm2, %v3556_v38  ;;  %s4107_s2 = sld [smem:[#allocation9_spill]]  ;;  %s3558_s22 = smov 120   ;;  %vm1009_vm3 = vcmask 64512   ;;  %vm1679_vm4 = vcmask 130048   ;;  %vm1681_vm5 = vcmask 195584  }
 0x162   : > { %v3778_v35 = vld [vmem:[#allocation2] sm:$0xff]  ;;  %v3416_v36 = vpack.c.bf16 %v913_v34, %v912_v32  ;;  %s3559_s23 = smov 96   ;;  %s3560_s18 = smov 80   ;;  %v1003_v60 = vshrl.u32 %v1002_v59, 7  ;;  %vm2608_vm6 = vcmask 523264  }
 0x163   : > { %3266 = vmatprep.mubr.msk.f32.mxu1 %vm920_vm1, %v3778_v35  ;;  %3413 = vmatprep.subr.bf16.mxu1 %v3412_v33  ;;  %s3561_s20 = smov 88   ;;  %s3562_s0 = smov 72  }
 0x164   : > { %3415 = vmatpush3.bf16.msra.mxu1 %v3412_v33  ;;  %s3563_s30 = smov 112   ;;  %s3564_s24 = smov 104   ;;  %v1004_v61 = vsub.s32 0, %v1003_v60  ;;  %v1685_v11 = vsub.s32 1, %v1003_v60 }
 0x165   : > { %3417 = vmatprep.subr.bf16.mxu1 %v3416_v36  ;;  %s3565_s25 = smov 56   ;;  %s3566_s26 = smov 64  }
 0x166   : > { %v3782_v37 = vld [vmem:[#allocation2 + $0x8] sm:$0xff]  ;;  %p3171_p5 = scmp.ne.s32.totalorder %s3693_s28, 1 }
 0x167   : > { %s4108_s1 = scalar_lea.vmem %s4107_s2, %s3699_s29  ;;  %s4117_s28 = sld [smem:[#allocation15_spill]] (!%p3171_p5) }
 0x168   : > { %3419 = vmatpush3.bf16.msra.mxu1 %v3416_v36  ;;  %v3131_v39 = vld [vmem:[%s4108_s1] ss:$0 sm:$0xff]  ;;  %s4111_s1 = scalar_lea.vmem %s4068_s8, %s3699_s29 }
 0x169   : > { %3269 = vmatprep.subr.mxu1 %v3556_v38 }
 0x16b   : > { %3267 = vmatmul.mubr.msk.f32.vlgmr.msra.gmra.mrb[0].mxu1 %vm920_vm1, %v3782_v37 }
 0x16c   : > { %3271 = vmatprep.mubr.msk.f32.mxu1 %vm3557_vm2, %v3556_v38 }
 0x23e   : > { %v3268_v40 = vpop.f32.mrb[0].mxu1 }
 0x23f   : > { %v993_v41 = vpop.f32.mrb[1].mxu1  ;;  %v3805_v43 = vadd.f32 %v3268_v40, %v3131_v39 }
 0x240   : > { %v3797_v42 = vadd.f32 %v3131_v39, %v993_v41 }
 0x242   : > { %1171 = vrot.lane.b32.xlu1 %v3797_v42, %s3558_s22  ;;  %1007 = vrot.lane.b32.xlu0 %v3797_v42, %s3559_s23 }
 0x246   : > { %1338 = vrot.lane.b32.xlu1 %v3797_v42, %s3560_s18  ;;  %1173 = vrot.lane.b32.xlu0 %v3797_v42, %s3561_s20 }
 0x24a   : > { %1503 = vrot.lane.b32.xlu1 %v3797_v42, %s3562_s0  ;;  %1336 = vrot.lane.b32.xlu0 %v3797_v42, %s3563_s30 }
 0x24e   : > { %1688 = vrot.lane.b32.xlu1 %v3805_v43, %s3559_s23  ;;  %1501 = vrot.lane.b32.xlu0 %v3797_v42, %s3564_s24  ;;  %s3567_s23 = smov 40  }
 0x252   : > { %1851 = vrot.lane.b32.xlu1 %v3805_v43, %s3558_s22  ;;  %1853 = vrot.lane.b32.xlu0 %v3805_v43, %s3561_s20  ;;  %s4109_s22 = sld [smem:[#allocation5_spill]]  ;;  %s3569_s20 = smov 8  }
 0x256   : > { %2016 = vrot.lane.b32.xlu1 %v3805_v43, %s3563_s30  ;;  %2018 = vrot.lane.b32.xlu0 %v3805_v43, %s3560_s18  ;;  %s3568_s18 = smov 48   ;;  %s3571_s30 = smov 24  }
 0x258   : > { %v897_v62 = vld [vmem:[%s4109_s22] sm:$0x3]  ;;  %s4113_s22 = sld [smem:[#allocation11_spill]] (!%p3171_p5) }
 0x259   : > { %v1005_v63 = vrot.slane %v897_v62, %v1004_v61  ;;  %v1686_v16 = vrot.slane %v897_v62, %v1685_v11 }
 0x25a   : > { %2181 = vrot.lane.b32.xlu1 %v3805_v43, %s3564_s24  ;;  %2183 = vrot.lane.b32.xlu0 %v3805_v43, %s3562_s0  ;;  %s3570_s0 = smov 16  }
 0x25e   : > { %1260 = vrot.lane.b32.xlu1 %v3797_v42, %s3565_s25  ;;  %1095 = vrot.lane.b32.xlu0 %v3797_v42, %s3566_s26 }
 0x2b4   : > { %v1172_v44 = vpop.permute.xlu1 %1171  ;;  %v1008_v45 = vpop.permute.xlu0 %1007 }
 0x2b5   : > { %3270 = vmatpush3.xpose.msk.msra.mxu1 %vm1009_vm3, %v1008_v45 }
 0x2b6   : > { %3274 = vmatprep.subr.mxu1 %v3556_v38 }
 0x2b8   : > { %v1339_v46 = vpop.permute.xlu1 %1338  ;;  %3272 = vmatmul.mubr.msk.f32.vlgmr.msra.gmra.mrb[2].mxu1 %vm1009_vm3, %v3797_v42  ;;  %v1174_v47 = vpop.permute.xlu0 %1173 }
 0x2b9   : > { %3280 = vmatpush3.xpose.msk.msra.mxu0 %vm1009_vm3, %v1174_v47  ;;  %3276 = vmatprep.mubr.msk.f32.mxu1 %vm3557_vm2, %v3556_v38 }
 0x2ba   : > { %3289 = vmatprep.subr.mxu0 %v3556_v38 }
 0x2bc   : > { %v1504_v48 = vpop.permute.xlu1 %1503  ;;  %3282 = vmatmul.mubr.msk.f32.vlgmr.msra.gmra.mrb[0].mxu0 %vm1009_vm3, %v1172_v44  ;;  %v1337_v49 = vpop.permute.xlu0 %1336 }
 0x2bd   : > { %3290 = vmatpush3.xpose.msk.msra.mxu0 %vm1009_vm3, %v1339_v46  ;;  %3291 = vmatprep.mubr.msk.f32.mxu0 %vm3557_vm2, %v3556_v38 }
 0x2be   : > { %3299 = vmatprep.subr.mxu0 %v3556_v38 }
 0x2c0   : > { %3292 = vmatmul.mubr.msk.f32.vlgmr.msra.gmra.mrb[2].mxu0 %vm1009_vm3, %v1337_v49  ;;  %v1502_v50 = vpop.permute.xlu0 %1501  ;;  %v1689_v51 = vpop.permute.xlu1 %1688 }
 0x2c1   : > { %3300 = vmatpush3.xpose.msk.msra.mxu0 %vm1009_vm3, %v1504_v48  ;;  %3301 = vmatprep.mubr.msk.f32.mxu0 %vm3557_vm2, %v3556_v38 }
 0x2c2   : > { %3309 = vmatprep.subr.mxu0 %v3556_v38 }
 0x2c4   : > { %3302 = vmatmul.mubr.msk.f32.vlgmr.msra.gmra.mrb[4].mxu0 %vm1009_vm3, %v1502_v50  ;;  %v1854_v52 = vpop.permute.xlu0 %1853  ;;  %v1852_v53 = vpop.permute.xlu1 %1851 }
 0x2c5   : > { %3310 = vmatpush3.xpose.msk.msra.mxu0 %vm1009_vm3, %v1689_v51  ;;  %3311 = vmatprep.mubr.msk.f32.mxu0 %vm3557_vm2, %v3556_v38 }
 0x2c6   : > { %3319 = vmatprep.subr.mxu0 %v3556_v38 }
 0x2c8   : > { %3312 = vmatmul.mubr.msk.f32.vlgmr.msra.gmra.mrb[6].mxu0 %vm1009_vm3, %v3805_v43  ;;  %v2019_v54 = vpop.permute.xlu0 %2018  ;;  %v2017_v56 = vpop.permute.xlu1 %2016 }
 0x2c9   : > { %3320 = vmatpush3.xpose.msk.msra.mxu0 %vm1009_vm3, %v1854_v52  ;;  %3321 = vmatprep.mubr.msk.f32.mxu0 %vm3557_vm2, %v3556_v38 }
 0x2ca   : > { %3329 = vmatprep.subr.mxu0 %v3556_v38 }
 0x2cc   : > { %3322 = vmatmul.mubr.msk.f32.vlgmr.msra.gmra.mrb[8].mxu0 %vm1009_vm3, %v1852_v53  ;;  %v2184_v55 = vpop.permute.xlu0 %2183  ;;  %v2182_v58 = vpop.permute.xlu1 %2181 }
 0x2cd   : > { %3330 = vmatpush3.xpose.msk.msra.mxu0 %vm1009_vm3, %v2019_v54  ;;  %3331 = vmatprep.mubr.msk.f32.mxu0 %vm3557_vm2, %v3556_v38 }
 0x2ce   : > { %3339 = vmatprep.subr.mxu0 %v3556_v38 }
 0x2d0   : > { %3332 = vmatmul.mubr.msk.f32.vlgmr.msra.gmra.mrb[10].mxu0 %vm1009_vm3, %v2017_v56  ;;  %v1096_v57 = vpop.permute.xlu0 %1095  ;;  %v3874_v34 = vpop.permute.xlu1 %1260 }
 0x2d1   : > { %3275 = vmatpush3.msra.mxu1 %v1096_v57  ;;  %3340 = vmatpush3.xpose.msk.msra.mxu0 %vm1009_vm3, %v2184_v55 }
 0x2d2   : > { %3341 = vmatprep.mubr.msk.f32.mxu0 %vm3557_vm2, %v3556_v38  ;;  %3284 = vmatprep.subr.mxu1 %v3556_v38 }
 0x2d4   : > { %3342 = vmatmul.mubr.msk.f32.vlgmr.msra.gmra.mrb[12].mxu0 %vm1009_vm3, %v2182_v58 }
 0x38b   : > { %v1080_v0 = vpop.f32.mrb[2].mxu1 }
 0x38c   : > { %v1081_v1 = vadd.f32 %v1080_v0, %v1005_v63  ;;  %v3273_v2 = vpop.f32.mrb[3].mxu1 }
 0x38e   : > { %v1084_v3 = vsel %vm1009_vm3, %v1081_v1, -inf }
 0x38f   : > { %1085 = vmax.xlane.f32.xlu0 %v1084_v3  ;;  %v1245_v4 = vpop.f32.mrb[0].mxu0 }
 0x390   : > { %v1246_v5 = vadd.f32 %v1245_v4, %v1005_v63  ;;  %v3283_v6 = vpop.f32.mrb[1].mxu0 }
 0x392   : > { %v1249_v7 = vsel %vm1009_vm3, %v1246_v5, -inf }
 0x393   : > { %1250 = vmax.xlane.f32.xlu1 %v1249_v7  ;;  %v1410_v8 = vpop.f32.mrb[2].mxu0 }
 0x394   : > { %v1411_v9 = vadd.f32 %v1410_v8, %v1005_v63  ;;  %v3293_v10 = vpop.f32.mrb[3].mxu0 }
 0x396   : > { %v1414_v12 = vsel %vm1009_vm3, %v1411_v9, -inf }
 0x397   : > { %1415 = vmax.xlane.f32.xlu0 %v1414_v12  ;;  %v1575_v13 = vpop.f32.mrb[4].mxu0 }
 0x398   : > { %v1576_v14 = vadd.f32 %v1575_v13, %v1005_v63  ;;  %v3303_v15 = vpop.f32.mrb[5].mxu0 }
 0x39a   : > { %v1579_v17 = vsel %vm1009_vm3, %v1576_v14, -inf }
 0x39b   : > { %1580 = vmax.xlane.f32.xlu0 %v1579_v17  ;;  %v1760_v18 = vpop.f32.mrb[6].mxu0 }
 0x39c   : > { %v1761_v19 = vadd.f32 %v1760_v18, %v1686_v16  ;;  %v3313_v20 = vpop.f32.mrb[7].mxu0 }
 0x39e   : > { %v1764_v21 = vsel %vm1009_vm3, %v1761_v19, -inf }
 0x39f   : > { %1765 = vmax.xlane.f32.xlu1 %v1764_v21  ;;  %v1925_v22 = vpop.f32.mrb[8].mxu0 }
 0x3a0   : > { %v1926_v23 = vadd.f32 %v1925_v22, %v1686_v16  ;;  %v3323_v24 = vpop.f32.mrb[9].mxu0 }
 0x3a2   : > { %v1929_v25 = vsel %vm1009_vm3, %v1926_v23, -inf }
 0x3a3   : > { %1930 = vmax.xlane.f32.xlu0 %v1929_v25  ;;  %v2090_v26 = vpop.f32.mrb[10].mxu0 }
 0x3a4   : > { %v2091_v27 = vadd.f32 %v2090_v26, %v1686_v16  ;;  %v3333_v28 = vpop.f32.mrb[11].mxu0 }
 0x3a6   : > { %v2094_v29 = vsel %vm1009_vm3, %v2091_v27, -inf }
 0x3a7   : > { %2095 = vmax.xlane.f32.xlu1 %v2094_v29  ;;  %v2255_v30 = vpop.f32.mrb[12].mxu0 }
 0x3a8   : > { %v2256_v31 = vadd.f32 %v2255_v30, %v1686_v16  ;;  %v3343_v32 = vpop.f32.mrb[13].mxu0 }
 0x3aa   : > { %v2259_v33 = vsel %vm1009_vm3, %v2256_v31, -inf }
 0x3ab   : > { %2260 = vmax.xlane.f32.xlu0 %v2259_v33 }
 0x3b8   : > { %1590 = vrot.lane.b32.xlu1 %v3797_v42, %s3567_s23 }
 0x3c1   : > { %1425 = vrot.lane.b32.xlu0 %v3797_v42, %s3568_s18 }
 0x41c   : > { %v1086_v36 = vpop.xlane.xlu0 %1085 }
 0x41d   : > { %v1087_v39 = vsub.f32 %v1081_v1, %v1086_v36 }
 0x41f   : > { %v1088_v40 = vmul.f32 1.442695, %v1087_v39 }
 0x420   : > { %v1251_v41 = vpop.xlane.xlu1 %1250 }
 0x421   : > { %3496 = vpow2.f32 %v1088_v40  ;;  %v1252_v44 = vsub.f32 %v1246_v5, %v1251_v41 }
 0x423   : > { %v1253_v45 = vmul.f32 1.442695, %v1252_v44 }
 0x424   : > { %v1416_v46 = vpop.xlane.xlu0 %1415 }
 0x425   : > { %3498 = vpow2.f32 %v1253_v45  ;;  %v1417_v47 = vsub.f32 %v1411_v9, %v1416_v46 }
 0x427   : > { %v1418_v48 = vmul.f32 1.442695, %v1417_v47 }
 0x428   : > { %v1581_v49 = vpop.xlane.xlu0 %1580 }
 0x429   : > { %3500 = vpow2.f32 %v1418_v48  ;;  %v1582_v50 = vsub.f32 %v1576_v14, %v1581_v49 }
 0x42b   : > { %v3497_v51 = vpop.eup %3496  ;;  %v1583_v52 = vmul.f32 1.442695, %v1582_v50 }
 0x42c   : > { %v1090_v42 = vsel %vm1009_vm3, %v3497_v51, 0.0  ;;  %v1766_v59 = vpop.xlane.xlu1 %1765 }
 0x42d   : > { %3502 = vpow2.f32 %v1583_v52  ;;  %1091 = vadd.xlane.f32.xlu1 %v1090_v42  ;;  %v1767_v60 = vsub.f32 %v1761_v19, %v1766_v59  ;;  %v902_v59 = vld [vmem:[%s3714_s3 + $0x18] sm:$0xff] }
 0x42f   : > { %v3499_v53 = vpop.eup %3498  ;;  %v1768_v0 = vmul.f32 1.442695, %v1767_v60 }
 0x430   : > { %v1255_v54 = vsel %vm1009_vm3, %v3499_v53, 0.0  ;;  %v1931_v61 = vpop.xlane.xlu0 %1930 }
 0x431   : > { %1256 = vadd.xlane.f32.xlu0 %v1255_v54  ;;  %v1932_v63 = vsub.f32 %v1926_v23, %v1931_v61  ;;  %3504 = vpow2.f32 %v1768_v0 }
 0x433   : > { %v3501_v55 = vpop.eup %3500  ;;  %v1933_v3 = vmul.f32 1.442695, %v1932_v63 }
 0x434   : > { %v1420_v56 = vsel %vm1009_vm3, %v3501_v55, 0.0  ;;  %v2096_v62 = vpop.xlane.xlu1 %2095 }
 0x435   : > { %1421 = vadd.xlane.f32.xlu1 %v1420_v56  ;;  %v2097_v1 = vsub.f32 %v2091_v27, %v2096_v62  ;;  %3506 = vpow2.f32 %v1933_v3  ;;  %v900_v56 = vld [vmem:[%s3714_s3 + $0x8] sm:$0xff] }
 0x437   : > { %v3879_v57 = vpop.eup %3502  ;;  %v2098_v4 = vmul.f32 1.442695, %v2097_v1 }
 0x438   : > { %v1585_v58 = vsel %vm1009_vm3, %v3879_v57, 0.0  ;;  %v2261_v2 = vpop.xlane.xlu0 %2260  ;;  %v1591_v15 = vpop.permute.xlu1 %1590 }
 0x439   : > { %1586 = vadd.xlane.f32.xlu0 %v1585_v58  ;;  %v2262_v5 = vsub.f32 %v2256_v31, %v2261_v2  ;;  %3508 = vpow2.f32 %v2098_v4  ;;  %v901_v58 = vld [vmem:[%s3714_s3 + $0x10] sm:$0xff] }
 0x43a   : > { %v3424_v60 = vpack.c.bf16 %v902_v59, %v901_v58  ;;  %v2594_v58 = vld [vmem:[%s3741_s19] sm:$0xff]  ;;  %v2595_v59 = vld [vmem:[%s3741_s19 + $0x8] sm:$0xff] }
 0x43b   : > { %v2263_v6 = vmul.f32 1.442695, %v2262_v5  ;;  %v3505_v7 = vpop.eup %3504 }
 0x43c   : > { %v1770_v9 = vsel %vm1009_vm3, %v3505_v7, 0.0  ;;  %v1426_v16 = vpop.permute.xlu0 %1425 }
 0x43d   : > { %3510 = vpow2.f32 %v2263_v6 }
 0x43f   : > { %v3887_v8 = vpop.eup %3506 }
 0x440   : > { %v1935_v12 = vsel %vm1009_vm3, %v3887_v8, 0.0 }
 0x443   : > { %v3890_v10 = vpop.eup %3508 }
 0x444   : > { %v2100_v11 = vsel %vm1009_vm3, %v3890_v10, 0.0 }
 0x446   : > { %1940 = vrot.lane.b32.xlu1 %v3805_v43, %s3565_s25  ;;  %s4110_s25 = scalar_lea.vmem %s4067_s7, %s3699_s29 }
 0x447   : > { %v3896_v13 = vpop.eup %3510 }
 0x448   : > { %v2265_v14 = vsel %vm1009_vm3, %v3896_v13, 0.0 }
 0x44f   : > { %1775 = vrot.lane.b32.xlu0 %v3805_v43, %s3566_s26 }
 0x46a   : > { %1771 = vadd.xlane.f32.xlu1 %v1770_v9 }
 0x46e   : > { %2101 = vadd.xlane.f32.xlu1 %v2100_v11  ;;  %1936 = vadd.xlane.f32.xlu0 %v1935_v12 }
 0x472   : > { %2266 = vadd.xlane.f32.xlu1 %v2265_v14 }
 0x483   : > { %2270 = vrot.lane.b32.xlu1 %v3805_v43, %s3567_s23  ;;  %s4112_s23 = scalar_lea.vmem %s4069_s9, %s3699_s29  ;;  %s4116_s29 = sld [smem:[#allocation13_spill]] (!%p3171_p5) }
 0x484   : > { %2105 = vrot.lane.b32.xlu0 %v3805_v43, %s3568_s18 }
 0x4ba   : > { %v1092_v17 = vpop.xlane.xlu1 %1091 }
 0x4bb   : > { %3512 = vrcp.f32 %v1092_v17  ;;  %v3158_v17 = vld [vmem:[%s4110_s25] ss:$0 sm:$0xff]  ;;  %s4115_s25 = sld [smem:[#allocation12_spill]] (!%p3171_p5) }
 0x4be   : > { %v1257_v18 = vpop.xlane.xlu0 %1256 }
 0x4bf   : > { %3514 = vrcp.f32 %v1257_v18 }
 0x4c2   : > { %v1422_v19 = vpop.xlane.xlu1 %1421 }
 0x4c3   : > { %3516 = vrcp.f32 %v1422_v19 }
 0x4c5   : > { %v3513_v20 = vpop.eup %3512 }
 0x4c6   : > { %v1094_v21 = vmul.f32 %v3513_v20, %v3497_v51  ;;  %v1587_v22 = vpop.xlane.xlu0 %1586  ;;  %v1941_v29 = vpop.permute.xlu1 %1940 }
 0x4c7   : > { %3518 = vrcp.f32 %v1587_v22 }
 0x4c8   : > { %3277 = vmatmul.mubr.msk.f32.vlgmr.msra.gmra.mrb[4].mxu1 %vm1009_vm3, %v1094_v21 }
 0x4c9   : > { %v3515_v23 = vpop.eup %3514  ;;  %3285 = vmatpush3.msra.mxu1 %v3874_v34  ;;  %3286 = vmatprep.mubr.msk.f32.mxu1 %vm3557_vm2, %v3556_v38 }
 0x4ca   : > { %v1259_v43 = vmul.f32 %v3515_v23, %v3499_v53  ;;  %3294 = vmatprep.subr.mxu1 %v3556_v38  ;;  %v1776_v28 = vpop.permute.xlu0 %1775 }
 0x4cc   : > { %3287 = vmatmul.mubr.msk.f32.vlgmr.msra.gmra.mrb[6].mxu1 %vm1009_vm3, %v1259_v43 }
 0x4cd   : > { %v3517_v24 = vpop.eup %3516  ;;  %3295 = vmatpush3.msra.mxu1 %v1426_v16  ;;  %3296 = vmatprep.mubr.msk.f32.mxu1 %vm3557_vm2, %v3556_v38 }
 0x4ce   : > { %v1424_v25 = vmul.f32 %v3517_v24, %v3501_v55  ;;  %3304 = vmatprep.subr.mxu1 %v3556_v38  ;;  %v899_v55 = vld [vmem:[%s3714_s3] sm:$0xff] }
 0x4d0   : > { %3297 = vmatmul.mubr.msk.f32.vlgmr.msra.gmra.mrb[8].mxu1 %vm1009_vm3, %v1424_v25 }
 0x4d1   : > { %v3519_v26 = vpop.eup %3518  ;;  %3305 = vmatpush3.msra.mxu1 %v1591_v15  ;;  %3306 = vmatprep.mubr.msk.f32.mxu1 %vm3557_vm2, %v3556_v38 }
 0x4d2   : > { %v1589_v27 = vmul.f32 %v3519_v26, %v3879_v57  ;;  %3314 = vmatprep.subr.mxu1 %v3556_v38  ;;  %v3420_v57 = vpack.c.bf16 %v900_v56, %v899_v55 }
 0x4d4   : > { %3307 = vmatmul.mubr.msk.f32.vlgmr.msra.gmra.mrb[10].mxu1 %vm1009_vm3, %v1589_v27  ;;  %3421 = vmatprep.subr.bf16.mxu0 %v3420_v57 }
 0x4d5   : > { %3315 = vmatpush3.msra.mxu1 %v1776_v28  ;;  %3316 = vmatprep.mubr.msk.f32.mxu1 %vm3557_vm2, %v3556_v38 }
 0x4d6   : > { %3324 = vmatprep.subr.mxu1 %v3556_v38  ;;  %3423 = vmatpush3.bf16.msra.mxu0 %v3420_v57 }
 0x4d7   : > { %3425 = vmatprep.subr.bf16.mxu0 %v3424_v60 }
 0x4da   : > { %3427 = vmatpush3.bf16.msra.mxu0 %v3424_v60  ;;  %v3436_v60 = vpack.c.bf16 %v2595_v59, %v2594_v58  ;;  %v2742_v58 = vld [vmem:[%s4076_s16 + $0x10] sm:$0xff] (!%p3171_p5) }
 0x4dc   : > { %3437 = vmatprep.subr.bf16.mxu0 %v3436_v60 }
 0x4f7   : > { %v1772_v30 = vpop.xlane.xlu1 %1771 }
 0x4f8   : > { %3520 = vrcp.f32 %v1772_v30 }
 0x4fb   : > { %v2102_v31 = vpop.xlane.xlu1 %2101  ;;  %v1937_v32 = vpop.xlane.xlu0 %1936 }
 0x4fc   : > { %3522 = vrcp.f32 %v1937_v32 }
 0x4fd   : > { %3524 = vrcp.f32 %v2102_v31 }
 0x4ff   : > { %v2267_v33 = vpop.xlane.xlu1 %2266  ;;  %v2106_v44 = vpop.permute.xlu0 %2105 }
 0x500   : > { %3526 = vrcp.f32 %v2267_v33  ;;  %v2493_v33 = vld [vmem:[%s3731_s6] sm:$0xff] }
 0x502   : > { %v3521_v34 = vpop.eup %3520 }
 0x503   : > { %v1774_v36 = vmul.f32 %v3521_v34, %v3505_v7  ;;  %v2271_v47 = vpop.permute.xlu1 %2270  ;;  %v2494_v34 = vld [vmem:[%s3731_s6 + $0x8] sm:$0xff] }
 0x505   : > { %3317 = vmatmul.mubr.msk.f32.vlgmr.msra.gmra.mrb[12].mxu1 %vm1009_vm3, %v1774_v36  ;;  %v3428_v36 = vpack.c.bf16 %v2494_v34, %v2493_v33 }
 0x506   : > { %3325 = vmatpush3.msra.mxu1 %v1941_v29  ;;  %3326 = vmatprep.mubr.msk.f32.mxu1 %vm3557_vm2, %v3556_v38  ;;  %v3523_v39 = vpop.eup %3522 }
 0x507   : > { %3334 = vmatprep.subr.mxu1 %v3556_v38  ;;  %v1939_v40 = vmul.f32 %v3523_v39, %v3887_v8  ;;  %v3525_v41 = vpop.eup %3524  ;;  %v2495_v39 = vld [vmem:[%s3731_s6 + $0x10] sm:$0xff] }
 0x508   : > { %v2104_v45 = vmul.f32 %v3525_v41, %v3890_v10 }
 0x509   : > { %3327 = vmatmul.mubr.msk.f32.vlgmr.msra.gmra.mrb[14].mxu1 %vm1009_vm3, %v1939_v40  ;;  %v2496_v40 = vld [vmem:[%s3731_s6 + $0x18] sm:$0xff] }
 0x50a   : > { %3335 = vmatpush3.msra.mxu1 %v2106_v44  ;;  %3336 = vmatprep.mubr.msk.f32.mxu1 %vm3557_vm2, %v3556_v38  ;;  %v3527_v46 = vpop.eup %3526  ;;  %v3432_v41 = vpack.c.bf16 %v2496_v40, %v2495_v39 }
 0x50b   : > { %3344 = vmatprep.subr.mxu1 %v3556_v38  ;;  %v2269_v48 = vmul.f32 %v3527_v46, %v3896_v13 }
 0x50d   : > { %3337 = vmatmul.mubr.msk.f32.vlgmr.msra.gmra.mrb[16].mxu1 %vm1009_vm3, %v2104_v45 }
 0x50e   : > { %3345 = vmatpush3.msra.mxu1 %v2271_v47  ;;  %3346 = vmatprep.mubr.msk.f32.mxu1 %vm3557_vm2, %v3556_v38 }
 0x50f   : > { %3429 = vmatprep.subr.bf16.mxu1 %v3428_v36 }
 0x511   : > { %3347 = vmatmul.mubr.msk.f32.vlgmr.msra.gmra.mrb[18].mxu1 %vm1009_vm3, %v2269_v48 }
 0x512   : > { %3431 = vmatpush3.bf16.msra.mxu1 %v3428_v36 }
 0x513   : > { %3433 = vmatprep.subr.bf16.mxu1 %v3432_v41 }
 0x516   : > { %3435 = vmatpush3.bf16.msra.mxu1 %v3432_v41 }
 0x59b   : > { %v1167_v49 = vpop.f32.mrb[4].mxu1 }
 0x59c   : > { %v3278_v50 = vpop.f32.mrb[5].mxu1 }
 0x59f   : > { %v1332_v51 = vpop.f32.mrb[6].mxu1 }
 0x5a0   : > { %1667 = vrot.lane.b32.xlu0 %v1332_v51, %s3569_s20  ;;  %v3288_v52 = vpop.f32.mrb[7].mxu1  ;;  %v3161_v51 = vld [vmem:[%s4111_s1] ss:$0 sm:$0xff] }
 0x5a3   : > { %v1497_v42 = vpop.f32.mrb[8].mxu1 }
 0x5a4   : > { %1671 = vrot.lane.b32.xlu1 %v1497_v42, %s3570_s0  ;;  %v3298_v53 = vpop.f32.mrb[9].mxu1  ;;  %v3162_v42 = vld [vmem:[%s4112_s23] ss:$0 sm:$0xff]  ;;  %s4118_s23 = sld [smem:[#allocation16_spill]] (!%p3171_p5) }
 0x5a7   : > { %v1662_v54 = vpop.f32.mrb[10].mxu1 }
 0x5a8   : > { %1675 = vrot.lane.b32.xlu1 %v1662_v54, %s3571_s30  ;;  %v3308_v38 = vpop.f32.mrb[11].mxu1 }
 0x5d8   : > { %v1847_v61 = vpop.f32.mrb[12].mxu1 }
 0x5d9   : > { %v3318_v62 = vpop.f32.mrb[13].mxu1 }
 0x5da   : > { %v2597_v62 = vld [vmem:[%s3741_s19 + $0x18] sm:$0xff] }
 0x5dc   : > { %v2012_v63 = vpop.f32.mrb[14].mxu1 }
 0x5dd   : > { %2347 = vrot.lane.b32.xlu0 %v2012_v63, %s3569_s20  ;;  %v3328_v0 = vpop.f32.mrb[15].mxu1  ;;  %s4114_s20 = sld [smem:[#allocation14_spill]] (!%p3171_p5) }
 0x5de   : > { %v2598_v0 = vld [vmem:[%s3741_s19 + $0x20] sm:$0xff] }
 0x5e0   : > { %v2177_v1 = vpop.f32.mrb[16].mxu1 }
 0x5e1   : > { %2351 = vrot.lane.b32.xlu0 %v2177_v1, %s3570_s0  ;;  %v3338_v2 = vpop.f32.mrb[17].mxu1  ;;  %v2599_v1 = vld [vmem:[%s3741_s19 + $0x28] sm:$0xff] }
 0x5e2   : > { %v3444_v2 = vpack.c.bf16 %v2599_v1, %v2598_v0 }
 0x5e4   : > { %v2342_v3 = vpop.f32.mrb[18].mxu1 }
 0x5e5   : > { %2355 = vrot.lane.b32.xlu1 %v2342_v3, %s3571_s30  ;;  %v3348_v4 = vpop.f32.mrb[19].mxu1  ;;  %v2600_v3 = vld [vmem:[%s3741_s19 + $0x30] sm:$0xff] }
 0x5e6   : > { %v2601_v4 = vld [vmem:[%s3741_s19 + $0x38] sm:$0xff] }
 0x612   : > { %v1668_v5 = vpop.permute.xlu0 %1667 }
 0x613   : > { %v1678_v7 = vsel %vm1009_vm3, %v1167_v49, %v1668_v5  ;;  %v3448_v5 = vpack.c.bf16 %v2601_v4, %v2600_v3 }
 0x616   : > { %v1672_v6 = vpop.permute.xlu1 %1671 }
 0x617   : > { %v1680_v8 = vsel %vm1679_vm4, %v1678_v7, %v1672_v6  ;;  %v3163_v6 = vld [vmem:[%s826_s27] ss:$0 sm:$0xff] }
 0x61a   : > { %v1676_v9 = vpop.permute.xlu1 %1675 }
 0x61b   : > { %v1682_v10 = vsel %vm1681_vm5, %v1680_v8, %v1676_v9 }
 0x61c   : > { %3357 = vmatprep.mubr.msk.f32.mxu0 %vm920_vm1, %v1682_v10 }
 0x64f   : > { %v2348_v11 = vpop.permute.xlu0 %2347 }
 0x650   : > { %v2358_v13 = vsel %vm1009_vm3, %v1847_v61, %v2348_v11  ;;  %v2596_v61 = vld [vmem:[%s3741_s19 + $0x10] sm:$0xff] }
 0x651   : > { %v3440_v63 = vpack.c.bf16 %v2597_v62, %v2596_v61  ;;  %v3172_v62 = vld [vmem:[%s4113_s22] ss:$0 sm:$0xff] (!%p3171_p5) }
 0x653   : > { %v2352_v12 = vpop.permute.xlu0 %2351 }
 0x654   : > { %v2359_v14 = vsel %vm1679_vm4, %v2358_v13, %v2352_v12 }
 0x657   : > { %v2356_v15 = vpop.permute.xlu1 %2355 }
 0x658   : > { %v2360_v16 = vsel %vm1681_vm5, %v2359_v14, %v2356_v15 }
 0x659   : > { %3358 = vmatmul.mubr.msk.f32.vlgmr.msra.gmra.mrb[14].mxu0 %vm920_vm1, %v2360_v16 }
 0x65a   : > { %3439 = vmatpush3.bf16.msra.mxu0 %v3436_v60  ;;  %v2743_v60 = vld [vmem:[%s4076_s16 + $0x18] sm:$0xff] (!%p3171_p5) }
 0x65b   : > { %3441 = vmatprep.subr.bf16.mxu0 %v3440_v63  ;;  %v3456_v61 = vpack.c.bf16 (!%p3171_p5), %v2743_v60, %v2742_v58 }
 0x65e   : > { %3443 = vmatpush3.bf16.msra.mxu0 %v3440_v63 }
 0x65f   : > { %3445 = vmatprep.subr.bf16.mxu0 %v3444_v2 }
 0x662   : > { %3447 = vmatpush3.bf16.msra.mxu0 %v3444_v2 }
 0x663   : > { %3449 = vmatprep.subr.bf16.mxu0 %v3448_v5 }
 0x666   : > { %3451 = vmatpush3.bf16.msra.mxu0 %v3448_v5 }
 0x72c   : > { %v3359_v18 = vpop.f32.mrb[14].mxu0 }
 0x72d   : > { %v2445_v19 = vadd.f32 %v3359_v18, %v3158_v17  ;;  %v2439_v20 = vpop.f32.mrb[15].mxu0 }
 0x72e   : > { %v2440_v21 = vadd.f32 %v3158_v17, %v2439_v20 }
 0x72f   : > { %v2449_v22 = vadd.f32 %v2445_v19, %v3782_v37 }
 0x730   : > { %v2448_v23 = vadd.f32 %v2440_v21, %v3778_v35  ;;  %v3166_v21 = vld [vmem:[%s834_s4] ss:$0 sm:$0xff] }
 0x731   : > { %v2453_v43 = vsel %vm920_vm1, %v2449_v22, 0.0 }
 0x732   : > { %2454 = vadd.xlane.f32.xlu1 %v2453_v43  ;;  %v2450_v24 = vsel %vm920_vm1, %v2448_v23, 0.0 }
 0x733   : > { %2451 = vadd.xlane.f32.xlu0 %v2450_v24 }
 0x7bf   : > { %v2455_v25 = vpop.xlane.xlu1 %2454 }
 0x7c0   : > { %v2458_v26 = vmul.f32 0.03125, %v2455_v25  ;;  %v2452_v27 = vpop.xlane.xlu0 %2451 }
 0x7c1   : > { %v2457_v28 = vmul.f32 0.03125, %v2452_v27 }
 0x7c2   : > { %v2460_v29 = vsub.f32 %v2449_v22, %v2458_v26 }
 0x7c3   : > { %v2459_v30 = vsub.f32 %v2448_v23, %v2457_v28 }
 0x7c4   : > { %v2462_v35 = vmul.f32 %v2460_v29, %v2460_v29 }
 0x7c5   : > { %v2461_v31 = vmul.f32 %v2459_v30, %v2459_v30 }
 0x7c6   : > { %v2466_v32 = vsel %vm920_vm1, %v2462_v35, 0.0 }
 0x7c7   : > { %v2463_v37 = vsel %vm920_vm1, %v2461_v31, 0.0 }
 0x7c8   : > { %2464 = vadd.xlane.f32.xlu0 %v2463_v37 }
 0x7cc   : > { %2467 = vadd.xlane.f32.xlu0 %v2466_v32 }
 0x855   : > { %v2465_v44 = vpop.xlane.xlu0 %2464 }
 0x856   : > { %v2469_v45 = vmul.f32 0.03125, %v2465_v44 }
 0x858   : > { %v2471_v46 = vadd.f32 1e-05, %v2469_v45 }
 0x859   : > { %v2468_v47 = vpop.xlane.xlu0 %2467 }
 0x85a   : > { %3528 = vrsqrt.f32 %v2471_v46  ;;  %v2470_v48 = vmul.f32 0.03125, %v2468_v47 }
 0x85c   : > { %v2472_v49 = vadd.f32 1e-05, %v2470_v48 }
 0x85e   : > { %3530 = vrsqrt.f32 %v2472_v49  ;;  %v3169_v49 = vld [vmem:[%s837_s5] ss:$0 sm:$0xff] }
 0x864   : > { %v3529_v50 = vpop.eup %3528 }
 0x865   : > { %v2475_v52 = vmul.f32 %v3529_v50, %v2459_v30 }
 0x867   : > { %v2483_v53 = vmul.f32 %v3161_v51, %v2475_v52  ;;  %v3170_v52 = vld [vmem:[%s840_s17] ss:$0 sm:$0xff] }
 0x868   : > { %v3531_v54 = vpop.eup %3530 }
 0x869   : > { %v2476_v38 = vmul.f32 %v3531_v54, %v2460_v29  ;;  %v2491_v55 = vadd.f32 %v3162_v42, %v2483_v53 }
 0x86b   : > { %v2484_v56 = vmul.f32 %v3161_v51, %v2476_v38  ;;  %3368 = vmatprep.mubr.msk.f32.mxu1 %vm920_vm1, %v2491_v55 }
 0x86d   : > { %v2492_v57 = vadd.f32 %v3162_v42, %v2484_v56  ;;  %v2740_v56 = vld [vmem:[%s4076_s16] sm:$0xff] (!%p3171_p5) }
 0x86f   : > { %3369 = vmatmul.mubr.msk.f32.vlgmr.msra.gmra.mrb[20].mxu1 %vm920_vm1, %v2492_v57 }
 0x942   : > { %v3370_v7 = vpop.f32.mrb[20].mxu1 }
 0x943   : > { %v2581_v8 = vadd.f32 %v3370_v7, %v3163_v6  ;;  %v2575_v9 = vpop.f32.mrb[21].mxu1 }
 0x944   : > { %v2576_v10 = vadd.f32 %v3163_v6, %v2575_v9 }
 0x945   : > { %v2587_v11 = vmul.f32 0.70710677, %v2581_v8  ;;  %v2585_v18 = vmul.f32 0.5, %v2581_v8 }
 0x946   : > { %v2586_v12 = vmul.f32 0.70710677, %v2576_v10  ;;  %v2584_v16 = vmul.f32 0.5, %v2576_v10 }
 0x947   : > { %3532 = verf.f32 %v2587_v11 }
 0x948   : > { %3534 = verf.f32 %v2586_v12 }
 0x951   : > { %v3533_v13 = vpop.eup %3532 }
 0x952   : > { %v3535_v14 = vpop.eup %3534  ;;  %v2591_v15 = vadd.f32 1.0, %v3533_v13 }
 0x953   : > { %v2590_v17 = vadd.f32 1.0, %v3535_v14 }
 0x954   : > { %v2593_v20 = vmul.f32 %v2591_v15, %v2585_v18 }
 0x955   : > { %v2592_v19 = vmul.f32 %v2590_v17, %v2584_v16 }
 0x957   : > { %3387 = vmatprep.mubr.msk.f32.mxu0 %vm2608_vm6, %v2592_v19 }
 0x958   : > { %3388 = vmatmul.mubr.msk.f32.vlgmr.msra.gmra.mrb[16].mxu0 %vm2608_vm6, %v2593_v20 }
 0xa2b   : > { %v3389_v22 = vpop.f32.mrb[16].mxu0 }
 0xa2c   : > { %v2687_v23 = vadd.f32 %v3389_v22, %v3166_v21  ;;  %v2681_v43 = vpop.f32.mrb[17].mxu0 }
 0xa2d   : > { %v2682_v24 = vadd.f32 %v3166_v21, %v2681_v43 }
 0xa2e   : > { %v2691_v25 = vadd.f32 %v2687_v23, %v2492_v57  ;;  %v2741_v57 = vld [vmem:[%s4076_s16 + $0x8] sm:$0xff] (!%p3171_p5) }
 0xa2f   : > { %v2690_v26 = vadd.f32 %v2682_v24, %v2491_v55  ;;  %v3452_v59 = vpack.c.bf16 (!%p3171_p5), %v2741_v57, %v2740_v56  ;;  %v2886_v24 = vld [vmem:[%s4114_s20] sm:$0xff] (!%p3171_p5) }
 0xa30   : > { %v2695_v27 = vsel %vm920_vm1, %v2691_v25, 0.0 }
 0xa31   : > { %2696 = vadd.xlane.f32.xlu0 %v2695_v27  ;;  %v2692_v28 = vsel %vm920_vm1, %v2690_v26, 0.0  ;;  %3453 = vmatprep.subr.bf16.mxu0 (!%p3171_p5), %v3452_v59 }
 0xa32   : > { %2693 = vadd.xlane.f32.xlu1 %v2692_v28  ;;  %3455 = vmatpush3.bf16.msra.mxu0 (!%p3171_p5), %v3452_v59  ;;  %v2889_v28 = vld [vmem:[%s4114_s20 + $0x18] sm:$0xff] (!%p3171_p5) }
 0xa33   : > { %3457 = vmatprep.subr.bf16.mxu0 (!%p3171_p5), %v3456_v61 }
 0xa36   : > { %3459 = vmatpush3.bf16.msra.mxu0 (!%p3171_p5), %v3456_v61 }
 0xabe   : > { %v2697_v29 = vpop.xlane.xlu0 %2696 }
 0xabf   : > { %v2699_v30 = vmul.f32 0.03125, %v2697_v29  ;;  %v2694_v31 = vpop.xlane.xlu1 %2693 }
 0xac0   : > { %v2698_v37 = vmul.f32 0.03125, %v2694_v31 }
 0xac1   : > { %v2701_v35 = vsub.f32 %v2691_v25, %v2699_v30  ;;  %v2887_v25 = vld [vmem:[%s4114_s20 + $0x8] sm:$0xff] (!%p3171_p5) }
 0xac2   : > { %v2700_v32 = vsub.f32 %v2690_v26, %v2698_v37  ;;  %v2888_v26 = vld [vmem:[%s4114_s20 + $0x10] sm:$0xff] (!%p3171_p5)  ;;  %v3460_v27 = vpack.c.bf16 (!%p3171_p5), %v2887_v25, %v2886_v24 }
 0xac3   : > { %v2703_v33 = vmul.f32 %v2701_v35, %v2701_v35  ;;  %v3464_v29 = vpack.c.bf16 (!%p3171_p5), %v2889_v28, %v2888_v26 }
 0xac4   : > { %v2702_v34 = vmul.f32 %v2700_v32, %v2700_v32  ;;  %3461 = vmatprep.subr.bf16.mxu1 (!%p3171_p5), %v3460_v27 }
 0xac5   : > { %v2707_v36 = vsel %vm920_vm1, %v2703_v33, 0.0  ;;  %3463 = vmatpush3.bf16.msra.mxu1 (!%p3171_p5), %v3460_v27 }
 0xac6   : > { %2708 = vadd.xlane.f32.xlu0 %v2707_v36  ;;  %v2704_v39 = vsel %vm920_vm1, %v2702_v34, 0.0  ;;  %3465 = vmatprep.subr.bf16.mxu1 (!%p3171_p5), %v3464_v29  ;;  %v3175_v36 = vld [vmem:[%s4115_s25] ss:$0 sm:$0xff] (!%p3171_p5) }
 0xac7   : > { %2705 = vadd.xlane.f32.xlu1 %v2704_v39 }
 0xac9   : > { %3467 = vmatpush3.bf16.msra.mxu1 (!%p3171_p5), %v3464_v29 }
 0xb53   : > { %v2709_v40 = vpop.xlane.xlu0 %2708 }
 0xb54   : > { %v2711_v41 = vmul.f32 0.03125, %v2709_v40  ;;  %v2706_v44 = vpop.xlane.xlu1 %2705  ;;  %v3176_v40 = vld [vmem:[%s4116_s29] ss:$0 sm:$0xff] (!%p3171_p5) }
 0xb55   : > { %v2710_v45 = vmul.f32 0.03125, %v2706_v44 }
 0xb56   : > { %v2713_v46 = vadd.f32 1e-05, %v2711_v41 }
 0xb57   : > { %v2712_v47 = vadd.f32 1e-05, %v2710_v45 }
 0xb58   : > { %3536 = vrsqrt.f32 %v2713_v46 }
 0xb59   : > { %3538 = vrsqrt.f32 %v2712_v47 }
 0xb62   : > { %v3537_v48 = vpop.eup %3536 }
 0xb63   : > { %v3539_v50 = vpop.eup %3538  ;;  %v2717_v51 = vmul.f32 %v3537_v48, %v2701_v35 }
 0xb64   : > { %v2716_v42 = vmul.f32 %v3539_v50, %v2700_v32  ;;  %2739 = sbr.rel (%p3171_p5) target bundleno = 3688 (0xe68), region = 116 }
 0xb65   : > { %v2725_v53 = vmul.f32 %v3169_v49, %v2717_v51 }
 0xb66   : > { %v2724_v54 = vmul.f32 %v3169_v49, %v2716_v42  ;;  %v3177_v49 = vld [vmem:[%s4117_s28] ss:$0 sm:$0xff] (!%p3171_p5) }
 0xb67   : > { %v2733_v38 = vadd.f32 %v3170_v52, %v2725_v53 }
 0xb68   : > { %v2732_v55 = vadd.f32 %v3170_v52, %v2724_v54 }
 0xb69   : > { %2735 = vst.msk [vmem:[#allocation2 + $0x8] sm:$0xff] %vm920_vm1, %v2733_v38 }
 0xb6a   : > { %2734 = vst.msk [vmem:[#allocation2] sm:$0xff] %vm920_vm1, %v2732_v55  ;;  %3398 = vmatprep.mubr.msk.f32.mxu0 (!%p3171_p5), %vm920_vm1, %v2732_v55 }
 0xb6b   : > { %3399 = vmatmul.mubr.msk.f32.vlgmr.msra.gmra.mrb[0].mxu0 %vm920_vm1, %v2733_v38 }
 0xc3e   : > { %v3400_v63 = vpop.f32.mrb[0].mxu0 }
 0xc3f   : > { %v2829_v0 = vadd.f32 %v3400_v63, %v3172_v62  ;;  %v2823_v1 = vpop.f32.mrb[1].mxu0 }
 0xc40   : > { %v2824_v2 = vadd.f32 %v3172_v62, %v2823_v1 }
 0xc41   : > { %v2835_v3 = vmul.f32 0.70710677, %v2829_v0  ;;  %v2833_v10 = vmul.f32 0.5, %v2829_v0 }
 0xc42   : > { %v2834_v4 = vmul.f32 0.70710677, %v2824_v2  ;;  %v2832_v7 = vmul.f32 0.5, %v2824_v2 }
 0xc43   : > { %3540 = verf.f32 %v2835_v3 }
 0xc44   : > { %3542 = verf.f32 %v2834_v4 }
 0xc4d   : > { %v3541_v5 = vpop.eup %3540 }
 0xc4e   : > { %v3543_v6 = vpop.eup %3542  ;;  %v2839_v9 = vadd.f32 1.0, %v3541_v5 }
 0xc4f   : > { %v2838_v8 = vadd.f32 1.0, %v3543_v6 }
 0xc50   : > { %v2841_v13 = vmul.f32 %v2839_v9, %v2833_v10 }
 0xc51   : > { %v2840_v11 = vmul.f32 %v2838_v8, %v2832_v7 }
 0xc52   : > { %v2847_v14 = vsel %vm920_vm1, %v2841_v13, 0.0 }
 0xc53   : > { %v2844_v12 = vsel %vm920_vm1, %v2840_v11, 0.0 }
 0xc54   : > { %2845 = vadd.xlane.f32.xlu0 %v2844_v12 }
 0xc58   : > { %2848 = vadd.xlane.f32.xlu0 %v2847_v14 }
 0xce1   : > { %v2846_v15 = vpop.xlane.xlu0 %2845 }
 0xce2   : > { %v2850_v16 = vmul.f32 0.03125, %v2846_v15 }
 0xce4   : > { %v2852_v17 = vsub.f32 %v2840_v11, %v2850_v16 }
 0xce5   : > { %v2849_v18 = vpop.xlane.xlu0 %2848 }
 0xce6   : > { %v2851_v19 = vmul.f32 0.03125, %v2849_v18  ;;  %v2854_v20 = vmul.f32 %v2852_v17, %v2852_v17 }
 0xce8   : > { %v2853_v21 = vsub.f32 %v2841_v13, %v2851_v19  ;;  %v2856_v22 = vsel %vm920_vm1, %v2854_v20, 0.0 }
 0xce9   : > { %2857 = vadd.xlane.f32.xlu1 %v2856_v22 }
 0xcea   : > { %v2855_v23 = vmul.f32 %v2853_v21, %v2853_v21 }
 0xcec   : > { %v2859_v43 = vsel %vm920_vm1, %v2855_v23, 0.0 }
 0xced   : > { %2860 = vadd.xlane.f32.xlu1 %v2859_v43 }
 0xd76   : > { %v2858_v30 = vpop.xlane.xlu1 %2857 }
 0xd77   : > { %v2862_v31 = vmul.f32 0.03125, %v2858_v30 }
 0xd79   : > { %v2864_v37 = vadd.f32 1e-05, %v2862_v31 }
 0xd7a   : > { %v2861_v35 = vpop.xlane.xlu1 %2860 }
 0xd7b   : > { %3544 = vrsqrt.f32 %v2864_v37  ;;  %v2863_v32 = vmul.f32 0.03125, %v2861_v35 }
 0xd7d   : > { %v2865_v33 = vadd.f32 1e-05, %v2863_v32 }
 0xd7f   : > { %3546 = vrsqrt.f32 %v2865_v33 }
 0xd85   : > { %v3545_v34 = vpop.eup %3544 }
 0xd86   : > { %v2868_v39 = vmul.f32 %v3545_v34, %v2852_v17 }
 0xd88   : > { %v2876_v41 = vmul.f32 %v3175_v36, %v2868_v39 }
 0xd89   : > { %v3547_v44 = vpop.eup %3546 }
 0xd8a   : > { %v2869_v45 = vmul.f32 %v3547_v44, %v2853_v21  ;;  %v2884_v46 = vadd.f32 %v3176_v40, %v2876_v41 }
 0xd8c   : > { %v2877_v47 = vmul.f32 %v3175_v36, %v2869_v45  ;;  %3409 = vmatprep.mubr.msk.f32.mxu1 %vm920_vm1, %v2884_v46 }
 0xd8e   : > { %v2885_v48 = vadd.f32 %v3176_v40, %v2877_v47 }
 0xd90   : > { %3410 = vmatmul.mubr.msk.f32.vlgmr.msra.gmra.mrb[0].mxu1 %vm920_vm1, %v2885_v48 }
 0xe63   : > { %v3411_v50 = vpop.f32.mrb[0].mxu1 }
 0xe64   : > { %v2975_v51 = vadd.f32 %v3411_v50, %v3177_v49  ;;  %v2969_v52 = vpop.f32.mrb[1].mxu1 }
 0xe65   : > { %v2970_v42 = vadd.f32 %v3177_v49, %v2969_v52 }
 0xe66   : > { %2979 = vst [vmem:[%s4118_s23 + $0x8] sm:$0xff] %v2975_v51 }
 0xe67   : > { %2978 = vst [vmem:[%s4118_s23] sm:$0xff] %v2970_v42 }
 0xe68 PF: > { %s4119_s27 = sld [smem:[#allocation3_spill]] }
 0xe6e   : > { %s32_s3 = sadd.s32 1, %s4119_s27  }
 0xe6f   : > { %p29_p6 = scmp.ge.s32.totalorder %s32_s3, 4  }
 0xe71   :  { %31 = sbr.rel (!%p29_p6) target bundleno = 14 (0xe), region = 175 }

</bundles_post_ra>
